<compile_context>
chip_gen: v7x
topology: tpu7x:2x2x1
jax: 0.10.0
libtpu: 0.0.40
codegen_flags: <defaults>
</compile_context>

<pallas_src>
import jax
import jax.numpy as jnp
from jax import lax
from jax.experimental import pallas as pl


# ----------------------------------------------------------------------------
# Fused kernel: wavefronted 2-layer LSTM + BN/FC head, everything in vregs.
# ----------------------------------------------------------------------------
def make_fused_kernel(seq_len, batch, batch_pad, input_dim, hidden, out_dim):
    T, B, BP, DIN, H = seq_len, batch, batch_pad, input_dim, hidden
    Hh, Hq = hidden // 2, hidden // 4
    G = 8 * H                      # fused gate width: 2 layers x 4 gates

    def kernel(x_ref, st_ref, lstm_ref, head_ref, out_ref):
        # -------- unpack packed slabs (static, tile-aligned ref slices) -----
        w_in = lstm_ref[0:DIN, :]                          # (DIN, 8H) layer-1 input proj
        w_cat = lstm_ref[DIN:DIN + 2 * H, :]               # (2H, 8H)  [[Whh1,Wih2],[0,Whh2]]
        b_wide = lstm_ref[DIN + 2 * H:DIN + 2 * H + 1, :]  # (1, 8H)   fused biases

        h10 = st_ref[0:BP, :]                              # initial layer-1 hidden
        h20 = st_ref[BP:2 * BP, :]                         # initial layer-2 hidden
        c10 = st_ref[2 * BP:3 * BP, :]
        c20 = st_ref[3 * BP:4 * BP, :]

        # -------- hoisted layer-1 input projection (parallel over T) --------
        # zadd[t] lanes: layer-1 gate cols = x_t@Wih1 + b1 ; layer-2 cols = b2.
        zadd = jnp.dot(x_ref[...], w_in,
                       preferred_element_type=jnp.float32) + b_wide      # (T*BP, 8H)

        # -------- gate-activation constants (hoisted off the serial chain) --
        # Weights of i/f/o columns were pre-scaled by 0.5 in the wrapper, so a
        # single tanh gives: sigma(z)=0.5*tanh(0.5 z)+0.5 on i/f/o, tanh(z) on g.
        lane = lax.broadcasted_iota(jnp.int32, (BP, G), 1)
        is_g = (lane >= 4 * H) & (lane < 6 * H)
        g_mul = jnp.where(is_g, 1.0, 0.5).astype(jnp.float32)
        g_add = jnp.where(is_g, 0.0, 0.5).astype(jnp.float32)

        # -------- wavefront recurrence: T+1 fused steps, h/c in vregs -------
        # Invariant before step s: h_cat = [h1_{s-1} | h2_{s-2}].
        h_cat = jnp.concatenate([h10, h20], axis=-1)       # (BP, 2H)
        c_cat = jnp.concatenate([c10, c20], axis=-1)
        for s in range(T + 1):                             # fully unrolled
            r0 = min(s, T - 1) * BP                        # aligned (8, 8H) slab
            z = zadd[r0:r0 + BP, :] + jnp.dot(
                h_cat, w_cat, preferred_element_type=jnp.float32)        # (BP, 8H)
            a = jnp.tanh(z) * g_mul + g_add                # all 8 gate blocks at once
            i_cat = a[:, 0:2 * H]
            f_cat = a[:, 2 * H:4 * H]
            g_cat = a[:, 4 * H:6 * H]
            o_cat = a[:, 6 * H:8 * H]
            c_new = f_cat * c_cat + i_cat * g_cat          # (BP, 2H), no concat needed
            h_new = o_cat * jnp.tanh(c_new)
            if s == 0:
                # Step 0: only layer 1 is valid (layer 2 would sit at t=-1);
                # restore layer 2's initial state before the steady-state steps.
                h_cat = jnp.concatenate([h_new[:, :H], h20], axis=-1)
                c_cat = jnp.concatenate([c_new[:, :H], c20], axis=-1)
            else:
                h_cat, c_cat = h_new, c_new
        # At s=T the layer-1 half was a discarded dummy step; the layer-2 half
        # now holds h2_{T-1} == out[:, -1, :].
        last_hidden = h_cat[:B, H:2 * H]                   # (B, H), real batch rows only

        # ------------------------------ MLP head ----------------------------
        r0h = H + Hh + Hq
        w1 = head_ref[0:H, 0:Hh]                           # (H, H/2)
        w2 = head_ref[H:H + Hh, 0:Hq]                      # (H/2, H/4)
        w3 = head_ref[H + Hh:r0h, 0:out_dim]               # (H/4, out)
        g1 = head_ref[r0h + 0:r0h + 1, 0:H]
        be1 = head_ref[r0h + 1:r0h + 2, 0:H]
        b1 = head_ref[r0h + 2:r0h + 3, 0:Hh]
        g2 = head_ref[r0h + 3:r0h + 4, 0:Hh]
        be2 = head_ref[r0h + 4:r0h + 5, 0:Hh]
        b2 = head_ref[r0h + 5:r0h + 6, 0:Hq]
        g3 = head_ref[r0h + 6:r0h + 7, 0:Hq]
        be3 = head_ref[r0h + 7:r0h + 8, 0:Hq]
        b3 = head_ref[r0h + 8:r0h + 9, 0:out_dim]

        eps = 1e-5

        def bn(v, gamma, beta):                            # training-mode batch stats
            mu = jnp.mean(v, axis=0, keepdims=True)
            var = jnp.mean((v - mu) ** 2, axis=0, keepdims=True)
            return (v - mu) * lax.rsqrt(var + eps) * gamma + beta

        y = bn(last_hidden, g1, be1)
        y = jnp.maximum(jnp.dot(y, w1, preferred_element_type=jnp.float32) + b1, 0.0)
        # dropout p=0.2 -> identity            # TODO(synk): train-mode dropout RNG
        y = bn(y, g2, be2)
        y = jnp.maximum(jnp.dot(y, w2, preferred_element_type=jnp.float32) + b2, 0.0)
        y = bn(y, g3, be3)
        out_ref[...] = jnp.dot(y, w3, preferred_element_type=jnp.float32) + b3

    return kernel


# ----------------------------------------------------------------------------
# One-time parameter packing: 2 lane-dense slabs, gate columns interleaved
# gate-type-major and pre-scaled by 0.5 for the sigmoid gates.
# ----------------------------------------------------------------------------
def pack_params(params):
    (wih1, whh1, b1l), (wih2, whh2, b2l) = params["lstm"]
    din, four_h = wih1.shape
    H = four_h // 4
    Hh, Hq = H // 2, H // 4
    out_dim = params["w3"].shape[1]

    def gcol(m, k):                                        # gate-k columns of [i,f,g,o]
        return m[:, k * H:(k + 1) * H]

    scale = (0.5, 0.5, 1.0, 0.5)                           # i, f, g, o
    zeros_dh = jnp.zeros((din, H), jnp.float32)
    zeros_hh = jnp.zeros((H, H), jnp.float32)
    w_in_cols, w_cat_cols, b_cols = [], [], []
    for k in range(4):
        s = scale[k]
        w_in_cols += [gcol(wih1, k) * s, zeros_dh]
        w_cat_cols += [jnp.concatenate([gcol(whh1, k) * s, zeros_hh], axis=0),
                       jnp.concatenate([gcol(wih2, k) * s, gcol(whh2, k) * s], axis=0)]
        b_cols += [gcol(b1l, k) * s, gcol(b2l, k) * s]
    w_in_wide = jnp.concatenate(w_in_cols, axis=1)         # (Din, 8H)
    w_cat = jnp.concatenate(w_cat_cols, axis=1)            # (2H, 8H)
    b_wide = jnp.concatenate(b_cols, axis=1)               # (1, 8H)
    lstm_slab = jnp.concatenate([w_in_wide, w_cat, b_wide], axis=0)   # (Din+2H+1, 8H)

    def pad_to(m, rows, cols):
        return jnp.pad(m, ((0, rows - m.shape[0]), (0, cols - m.shape[1])))

    head_slab = jnp.concatenate([
        pad_to(params["w1"], H, H),
        pad_to(params["w2"], Hh, H),
        pad_to(params["w3"], Hq, H),
        pad_to(params["g1"], 1, H), pad_to(params["be1"], 1, H), pad_to(params["b1"], 1, H),
        pad_to(params["g2"], 1, H), pad_to(params["be2"], 1, H), pad_to(params["b2"], 1, H),
        pad_to(params["g3"], 1, H), pad_to(params["be3"], 1, H), pad_to(params["b3"], 1, H),
    ], axis=0)                                             # (H+Hh+Hq+9, H)

    dims = (din, H, out_dim)
    return lstm_slab, head_slab, dims


# ----------------------------------------------------------------------------
# Forward wrapper: per-call data plumbing + single pallas_call (4 input DMAs).
# ----------------------------------------------------------------------------
def build_forward(dims):
    din, H, out_dim = dims

    def fwd(x_btd, h0, c0, lstm_slab, head_slab):
        B, T, Din = x_btd.shape
        assert Din == din and h0.shape[0] == 2, "kernel specialized to 2 LSTM layers"
        bp = max(8, ((B + 7) // 8) * 8)                    # sublane-aligned batch pad

        # Layout plumbing only: time-major, batch padded to 8 rows so every
        # per-timestep read in the kernel is a whole (8, 8H) sublane group.
        x_tm = jnp.transpose(x_btd.astype(jnp.float32), (1, 0, 2))       # (T, B, Din)
        x_flat = jnp.pad(x_tm, ((0, 0), (0, bp - B), (0, 0))).reshape(T * bp, Din)

        def pad_b(m):
            return jnp.pad(m.astype(jnp.float32), ((0, bp - B), (0, 0)))
        state_slab = jnp.concatenate(
            [pad_b(h0[0]), pad_b(h0[1]), pad_b(c0[0]), pad_b(c0[1])], axis=0)  # (4*bp, H)

        kernel = make_fused_kernel(T, B, bp, Din, H, out_dim)
        args = (x_flat, state_slab, lstm_slab, head_slab)
        return pl.pallas_call(
            kernel,
            out_shape=jax.ShapeDtypeStruct((B, out_dim), jnp.float32),
            in_specs=[pl.BlockSpec(a.shape, lambda: (0, 0)) for a in args],
            out_specs=pl.BlockSpec((B, out_dim), lambda: (0, 0)),
        )(*args)

    return jax.jit(fwd)


# ----------------------------------------------------------------------------
# Parameter init (deterministic, PyTorch-style uniform ranges)
# ----------------------------------------------------------------------------
def init_params(key, num_layers, input_dim, hidden_dim, output_dim):
    params = {"lstm": []}
    k = key

    def uniform(kk, shape, bound):
        return jax.random.uniform(kk, shape, jnp.float32, -bound, bound)

    lstm_bound = 1.0 / jnp.sqrt(hidden_dim)
    for layer in range(num_layers):
        din = input_dim if layer == 0 else hidden_dim
        k, k1, k2, k3, k4 = jax.random.split(k, 5)
        wih_t = uniform(k1, (din, 4 * hidden_dim), lstm_bound)           # (Din, 4H) [i,f,g,o]
        whh_t = uniform(k2, (hidden_dim, 4 * hidden_dim), lstm_bound)
        b_ih = uniform(k3, (1, 4 * hidden_dim), lstm_bound)
        b_hh = uniform(k4, (1, 4 * hidden_dim), lstm_bound)
        params["lstm"].append((wih_t, whh_t, b_ih + b_hh))

    h2, h4 = hidden_dim // 2, hidden_dim // 4
    k, k1, k2, k3, k4, k5, k6 = jax.random.split(k, 7)
    params["w1"] = uniform(k1, (hidden_dim, h2), 1.0 / jnp.sqrt(hidden_dim))
    params["b1"] = uniform(k2, (1, h2), 1.0 / jnp.sqrt(hidden_dim))
    params["w2"] = uniform(k3, (h2, h4), 1.0 / jnp.sqrt(h2))
    params["b2"] = uniform(k4, (1, h4), 1.0 / jnp.sqrt(h2))
    params["w3"] = uniform(k5, (h4, output_dim), 1.0 / jnp.sqrt(h4))
    params["b3"] = uniform(k6, (1, output_dim), 1.0 / jnp.sqrt(h4))
    params["g1"], params["be1"] = jnp.ones((1, hidden_dim)), jnp.zeros((1, hidden_dim))
    params["g2"], params["be2"] = jnp.ones((1, h2)), jnp.zeros((1, h2))
    params["g3"], params["be3"] = jnp.ones((1, h4)), jnp.zeros((1, h4))
    return params


# ----------------------------------------------------------------------------
# Pure-JAX reference (non-Pallas) for a correctness spot-check.
# ----------------------------------------------------------------------------
def reference_forward(x_btd, h0, c0, params):
    hi = jax.lax.Precision.HIGHEST
    (wih1, whh1, b1), (wih2, whh2, b2) = params["lstm"]
    H = whh1.shape[0]
    _, T, _ = x_btd.shape

    def cell(x_t, h, c, wih, whh, b):
        z = jnp.dot(x_t, wih, precision=hi) + jnp.dot(h, whh, precision=hi) + b
        i = jax.nn.sigmoid(z[:, 0 * H:1 * H])
        f = jax.nn.sigmoid(z[:, 1 * H:2 * H])
        g = jnp.tanh(z[:, 2 * H:3 * H])
        o = jax.nn.sigmoid(z[:, 3 * H:4 * H])
        c = f * c + i * g
        return o * jnp.tanh(c), c

    h1, c1, h2s, c2 = h0[0], c0[0], h0[1], c0[1]
    for t in range(T):
        h1, c1 = cell(x_btd[:, t, :], h1, c1, wih1, whh1, b1)
        h2s, c2 = cell(h1, h2s, c2, wih2, whh2, b2)

    eps = 1e-5

    def bn(v, g, be):
        mu = v.mean(0, keepdims=True)
        var = ((v - mu) ** 2).mean(0, keepdims=True)
        return (v - mu) / jnp.sqrt(var + eps) * g + be

    y = bn(h2s, params["g1"], params["be1"])
    y = jnp.maximum(jnp.dot(y, params["w1"], precision=hi) + params["b1"], 0.0)
    y = bn(y, params["g2"], params["be2"])
    y = jnp.maximum(jnp.dot(y, params["w2"], precision=hi) + params["b2"], 0.0)
    y = bn(y, params["g3"], params["be3"])
    return jnp.dot(y, params["w3"], precision=hi) + params["b3"]


if __name__ == "__main__":
    NUM_LAYERS, INPUT_DIM, HIDDEN_DIM, OUTPUT_DIM = 2, 16, 32, 4
    BATCH, SEQ = 2, 8

    root = jax.random.PRNGKey(0)
    k_param, k_x, k_h0, k_c0 = jax.random.split(root, 4)
    params = init_params(k_param, NUM_LAYERS, INPUT_DIM, HIDDEN_DIM, OUTPUT_DIM)
    x = jax.random.normal(k_x, (BATCH, SEQ, INPUT_DIM), jnp.float32)
    # H0/C0 sampled each forward, like torch.randn in the module's forward().
    h0 = jax.random.normal(k_h0, (NUM_LAYERS, BATCH, HIDDEN_DIM), jnp.float32)
    c0 = jax.random.normal(k_c0, (NUM_LAYERS, BATCH, HIDDEN_DIM), jnp.float32)

    lstm_slab, head_slab, dims = pack_params(params)       # one-time weight packing
    fwd = build_forward(dims)

    out = jax.block_until_ready(fwd(x, h0, c0, lstm_slab, head_slab))
    assert out.shape == (BATCH, OUTPUT_DIM), out.shape

    ref = jax.block_until_ready(reference_forward(x, h0, c0, params))
    import numpy as np
    np.testing.assert_allclose(np.asarray(out), np.asarray(ref), rtol=2e-3, atol=2e-3)
    print("KERNEL_OK")
</pallas_src>

<mosaic_0001>
module attributes {stable_mosaic.version = 11 : i64} {
  func.func @kernel(%arg0: memref<64x16xf32, #tpu.memory_space<vmem>>, %arg1: memref<32x32xf32, #tpu.memory_space<vmem>>, %arg2: memref<81x256xf32, #tpu.memory_space<vmem>>, %arg3: memref<65x32xf32, #tpu.memory_space<vmem>>, %arg4: memref<2x4xf32, #tpu.memory_space<vmem>>) attributes {dimension_semantics = [], scalar_prefetch = 0 : i64, scratch_operands = 0 : i64, tpu.core_type = #tpu.core_type<tc>} {
    %c0 = arith.constant 0 : index
    %c0_0 = arith.constant 0 : index
    %0 = vector.load %arg2[%c0, %c0_0] : memref<81x256xf32, #tpu.memory_space<vmem>>, vector<16x256xf32>
    %c16 = arith.constant 16 : index
    %c0_1 = arith.constant 0 : index
    %1 = vector.load %arg2[%c16, %c0_1] : memref<81x256xf32, #tpu.memory_space<vmem>>, vector<64x256xf32>
    %c80 = arith.constant 80 : index
    %c0_2 = arith.constant 0 : index
    %2 = vector.load %arg2[%c80, %c0_2] : memref<81x256xf32, #tpu.memory_space<vmem>>, vector<1x256xf32>
    %c0_3 = arith.constant 0 : index
    %c0_4 = arith.constant 0 : index
    %3 = vector.load %arg1[%c0_3, %c0_4] : memref<32x32xf32, #tpu.memory_space<vmem>>, vector<8x32xf32>
    %c8 = arith.constant 8 : index
    %c0_5 = arith.constant 0 : index
    %4 = vector.load %arg1[%c8, %c0_5] : memref<32x32xf32, #tpu.memory_space<vmem>>, vector<8x32xf32>
    %c16_6 = arith.constant 16 : index
    %c0_7 = arith.constant 0 : index
    %5 = vector.load %arg1[%c16_6, %c0_7] : memref<32x32xf32, #tpu.memory_space<vmem>>, vector<8x32xf32>
    %c24 = arith.constant 24 : index
    %c0_8 = arith.constant 0 : index
    %6 = vector.load %arg1[%c24, %c0_8] : memref<32x32xf32, #tpu.memory_space<vmem>>, vector<8x32xf32>
    %c0_9 = arith.constant 0 : index
    %c0_10 = arith.constant 0 : index
    %7 = vector.load %arg0[%c0_9, %c0_10] : memref<64x16xf32, #tpu.memory_space<vmem>>, vector<64x16xf32>
    %cst = arith.constant dense<0.000000e+00> : vector<64x256xf32>
    %8 = tpu.matmul %7, %0, %cst {dimension_numbers = #tpu.dot_dimension_numbers<[1], [0], [0], [1], [0, 0, 1, 1], [], []>} : vector<64x16xf32>, vector<16x256xf32>, vector<64x256xf32> -> vector<64x256xf32>
    %9 = vector.broadcast %2 : vector<1x256xf32> to vector<64x256xf32>
    %10 = arith.addf %8, %9 : vector<64x256xf32>
    %11 = tpu.iota {dimensions = array<i32: 1>} : vector<8x256xi32>
    %c128_i32 = arith.constant 128 : i32
    %12 = vector.broadcast %c128_i32 : i32 to vector<8x256xi32>
    %13 = arith.cmpi sge, %11, %12 : vector<8x256xi32>
    %c192_i32 = arith.constant 192 : i32
    %14 = vector.broadcast %c192_i32 : i32 to vector<8x256xi32>
    %15 = arith.cmpi slt, %11, %14 : vector<8x256xi32>
    %16 = arith.andi %13, %15 : vector<8x256xi1>
    %cst_11 = arith.constant 1.000000e+00 : f32
    %cst_12 = arith.constant 5.000000e-01 : f32
    %17 = vector.broadcast %cst_11 : f32 to vector<8x256xf32>
    %18 = vector.broadcast %cst_12 : f32 to vector<8x256xf32>
    %19 = arith.select %16, %17, %18 : vector<8x256xi1>, vector<8x256xf32>
    %cst_13 = arith.constant 0.000000e+00 : f32
    %cst_14 = arith.constant 5.000000e-01 : f32
    %20 = vector.broadcast %cst_13 : f32 to vector<8x256xf32>
    %21 = vector.broadcast %cst_14 : f32 to vector<8x256xf32>
    %22 = arith.select %16, %20, %21 : vector<8x256xi1>, vector<8x256xf32>
    %23 = tpu.concatenate %3, %4 in 1 : vector<8x32xf32>, vector<8x32xf32> -> vector<8x64xf32>
    %24 = tpu.concatenate %5, %6 in 1 : vector<8x32xf32>, vector<8x32xf32> -> vector<8x64xf32>
    %25 = vector.extract_strided_slice %10 {offsets = [0, 0], sizes = [8, 256], strides = [1, 1]} : vector<64x256xf32> to vector<8x256xf32>
    %cst_15 = arith.constant dense<0.000000e+00> : vector<8x256xf32>
    %26 = tpu.matmul %23, %1, %cst_15 {dimension_numbers = #tpu.dot_dimension_numbers<[1], [0], [0], [1], [0, 0, 1, 1], [], []>} : vector<8x64xf32>, vector<64x256xf32>, vector<8x256xf32> -> vector<8x256xf32>
    %27 = arith.addf %25, %26 : vector<8x256xf32>
    %28 = math.tanh %27 : vector<8x256xf32>
    %29 = arith.mulf %28, %19 : vector<8x256xf32>
    %30 = arith.addf %29, %22 : vector<8x256xf32>
    %31 = vector.extract_strided_slice %30 {offsets = [0, 0], sizes = [8, 64], strides = [1, 1]} : vector<8x256xf32> to vector<8x64xf32>
    %32 = vector.extract_strided_slice %30 {offsets = [0, 64], sizes = [8, 64], strides = [1, 1]} : vector<8x256xf32> to vector<8x64xf32>
    %33 = vector.extract_strided_slice %30 {offsets = [0, 128], sizes = [8, 64], strides = [1, 1]} : vector<8x256xf32> to vector<8x64xf32>
    %34 = vector.extract_strided_slice %30 {offsets = [0, 192], sizes = [8, 64], strides = [1, 1]} : vector<8x256xf32> to vector<8x64xf32>
    %35 = arith.mulf %32, %24 : vector<8x64xf32>
    %36 = arith.mulf %31, %33 : vector<8x64xf32>
    %37 = arith.addf %35, %36 : vector<8x64xf32>
    %38 = math.tanh %37 : vector<8x64xf32>
    %39 = arith.mulf %34, %38 : vector<8x64xf32>
    %40 = vector.extract_strided_slice %39 {offsets = [0, 0], sizes = [8, 32], strides = [1, 1]} : vector<8x64xf32> to vector<8x32xf32>
    %41 = tpu.concatenate %40, %4 in 1 : vector<8x32xf32>, vector<8x32xf32> -> vector<8x64xf32>
    %42 = vector.extract_strided_slice %37 {offsets = [0, 0], sizes = [8, 32], strides = [1, 1]} : vector<8x64xf32> to vector<8x32xf32>
    %43 = tpu.concatenate %42, %6 in 1 : vector<8x32xf32>, vector<8x32xf32> -> vector<8x64xf32>
    %44 = vector.extract_strided_slice %10 {offsets = [8, 0], sizes = [8, 256], strides = [1, 1]} : vector<64x256xf32> to vector<8x256xf32>
    %cst_16 = arith.constant dense<0.000000e+00> : vector<8x256xf32>
    %45 = tpu.matmul %41, %1, %cst_16 {dimension_numbers = #tpu.dot_dimension_numbers<[1], [0], [0], [1], [0, 0, 1, 1], [], []>} : vector<8x64xf32>, vector<64x256xf32>, vector<8x256xf32> -> vector<8x256xf32>
    %46 = arith.addf %44, %45 : vector<8x256xf32>
    %47 = math.tanh %46 : vector<8x256xf32>
    %48 = arith.mulf %47, %19 : vector<8x256xf32>
    %49 = arith.addf %48, %22 : vector<8x256xf32>
    %50 = vector.extract_strided_slice %49 {offsets = [0, 0], sizes = [8, 64], strides = [1, 1]} : vector<8x256xf32> to vector<8x64xf32>
    %51 = vector.extract_strided_slice %49 {offsets = [0, 64], sizes = [8, 64], strides = [1, 1]} : vector<8x256xf32> to vector<8x64xf32>
    %52 = vector.extract_strided_slice %49 {offsets = [0, 128], sizes = [8, 64], strides = [1, 1]} : vector<8x256xf32> to vector<8x64xf32>
    %53 = vector.extract_strided_slice %49 {offsets = [0, 192], sizes = [8, 64], strides = [1, 1]} : vector<8x256xf32> to vector<8x64xf32>
    %54 = arith.mulf %51, %43 : vector<8x64xf32>
    %55 = arith.mulf %50, %52 : vector<8x64xf32>
    %56 = arith.addf %54, %55 : vector<8x64xf32>
    %57 = math.tanh %56 : vector<8x64xf32>
    %58 = arith.mulf %53, %57 : vector<8x64xf32>
    %59 = vector.extract_strided_slice %10 {offsets = [16, 0], sizes = [8, 256], strides = [1, 1]} : vector<64x256xf32> to vector<8x256xf32>
    %cst_17 = arith.constant dense<0.000000e+00> : vector<8x256xf32>
    %60 = tpu.matmul %58, %1, %cst_17 {dimension_numbers = #tpu.dot_dimension_numbers<[1], [0], [0], [1], [0, 0, 1, 1], [], []>} : vector<8x64xf32>, vector<64x256xf32>, vector<8x256xf32> -> vector<8x256xf32>
    %61 = arith.addf %59, %60 : vector<8x256xf32>
    %62 = math.tanh %61 : vector<8x256xf32>
    %63 = arith.mulf %62, %19 : vector<8x256xf32>
    %64 = arith.addf %63, %22 : vector<8x256xf32>
    %65 = vector.extract_strided_slice %64 {offsets = [0, 0], sizes = [8, 64], strides = [1, 1]} : vector<8x256xf32> to vector<8x64xf32>
    %66 = vector.extract_strided_slice %64 {offsets = [0, 64], sizes = [8, 64], strides = [1, 1]} : vector<8x256xf32> to vector<8x64xf32>
    %67 = vector.extract_strided_slice %64 {offsets = [0, 128], sizes = [8, 64], strides = [1, 1]} : vector<8x256xf32> to vector<8x64xf32>
    %68 = vector.extract_strided_slice %64 {offsets = [0, 192], sizes = [8, 64], strides = [1, 1]} : vector<8x256xf32> to vector<8x64xf32>
    %69 = arith.mulf %66, %56 : vector<8x64xf32>
    %70 = arith.mulf %65, %67 : vector<8x64xf32>
    %71 = arith.addf %69, %70 : vector<8x64xf32>
    %72 = math.tanh %71 : vector<8x64xf32>
    %73 = arith.mulf %68, %72 : vector<8x64xf32>
    %74 = vector.extract_strided_slice %10 {offsets = [24, 0], sizes = [8, 256], strides = [1, 1]} : vector<64x256xf32> to vector<8x256xf32>
    %cst_18 = arith.constant dense<0.000000e+00> : vector<8x256xf32>
    %75 = tpu.matmul %73, %1, %cst_18 {dimension_numbers = #tpu.dot_dimension_numbers<[1], [0], [0], [1], [0, 0, 1, 1], [], []>} : vector<8x64xf32>, vector<64x256xf32>, vector<8x256xf32> -> vector<8x256xf32>
    %76 = arith.addf %74, %75 : vector<8x256xf32>
    %77 = math.tanh %76 : vector<8x256xf32>
    %78 = arith.mulf %77, %19 : vector<8x256xf32>
    %79 = arith.addf %78, %22 : vector<8x256xf32>
    %80 = vector.extract_strided_slice %79 {offsets = [0, 0], sizes = [8, 64], strides = [1, 1]} : vector<8x256xf32> to vector<8x64xf32>
    %81 = vector.extract_strided_slice %79 {offsets = [0, 64], sizes = [8, 64], strides = [1, 1]} : vector<8x256xf32> to vector<8x64xf32>
    %82 = vector.extract_strided_slice %79 {offsets = [0, 128], sizes = [8, 64], strides = [1, 1]} : vector<8x256xf32> to vector<8x64xf32>
    %83 = vector.extract_strided_slice %79 {offsets = [0, 192], sizes = [8, 64], strides = [1, 1]} : vector<8x256xf32> to vector<8x64xf32>
    %84 = arith.mulf %81, %71 : vector<8x64xf32>
    %85 = arith.mulf %80, %82 : vector<8x64xf32>
    %86 = arith.addf %84, %85 : vector<8x64xf32>
    %87 = math.tanh %86 : vector<8x64xf32>
    %88 = arith.mulf %83, %87 : vector<8x64xf32>
    %89 = vector.extract_strided_slice %10 {offsets = [32, 0], sizes = [8, 256], strides = [1, 1]} : vector<64x256xf32> to vector<8x256xf32>
    %cst_19 = arith.constant dense<0.000000e+00> : vector<8x256xf32>
    %90 = tpu.matmul %88, %1, %cst_19 {dimension_numbers = #tpu.dot_dimension_numbers<[1], [0], [0], [1], [0, 0, 1, 1], [], []>} : vector<8x64xf32>, vector<64x256xf32>, vector<8x256xf32> -> vector<8x256xf32>
    %91 = arith.addf %89, %90 : vector<8x256xf32>
    %92 = math.tanh %91 : vector<8x256xf32>
    %93 = arith.mulf %92, %19 : vector<8x256xf32>
    %94 = arith.addf %93, %22 : vector<8x256xf32>
    %95 = vector.extract_strided_slice %94 {offsets = [0, 0], sizes = [8, 64], strides = [1, 1]} : vector<8x256xf32> to vector<8x64xf32>
    %96 = vector.extract_strided_slice %94 {offsets = [0, 64], sizes = [8, 64], strides = [1, 1]} : vector<8x256xf32> to vector<8x64xf32>
    %97 = vector.extract_strided_slice %94 {offsets = [0, 128], sizes = [8, 64], strides = [1, 1]} : vector<8x256xf32> to vector<8x64xf32>
    %98 = vector.extract_strided_slice %94 {offsets = [0, 192], sizes = [8, 64], strides = [1, 1]} : vector<8x256xf32> to vector<8x64xf32>
    %99 = arith.mulf %96, %86 : vector<8x64xf32>
    %100 = arith.mulf %95, %97 : vector<8x64xf32>
    %101 = arith.addf %99, %100 : vector<8x64xf32>
    %102 = math.tanh %101 : vector<8x64xf32>
    %103 = arith.mulf %98, %102 : vector<8x64xf32>
    %104 = vector.extract_strided_slice %10 {offsets = [40, 0], sizes = [8, 256], strides = [1, 1]} : vector<64x256xf32> to vector<8x256xf32>
    %cst_20 = arith.constant dense<0.000000e+00> : vector<8x256xf32>
    %105 = tpu.matmul %103, %1, %cst_20 {dimension_numbers = #tpu.dot_dimension_numbers<[1], [0], [0], [1], [0, 0, 1, 1], [], []>} : vector<8x64xf32>, vector<64x256xf32>, vector<8x256xf32> -> vector<8x256xf32>
    %106 = arith.addf %104, %105 : vector<8x256xf32>
    %107 = math.tanh %106 : vector<8x256xf32>
    %108 = arith.mulf %107, %19 : vector<8x256xf32>
    %109 = arith.addf %108, %22 : vector<8x256xf32>
    %110 = vector.extract_strided_slice %109 {offsets = [0, 0], sizes = [8, 64], strides = [1, 1]} : vector<8x256xf32> to vector<8x64xf32>
    %111 = vector.extract_strided_slice %109 {offsets = [0, 64], sizes = [8, 64], strides = [1, 1]} : vector<8x256xf32> to vector<8x64xf32>
    %112 = vector.extract_strided_slice %109 {offsets = [0, 128], sizes = [8, 64], strides = [1, 1]} : vector<8x256xf32> to vector<8x64xf32>
    %113 = vector.extract_strided_slice %109 {offsets = [0, 192], sizes = [8, 64], strides = [1, 1]} : vector<8x256xf32> to vector<8x64xf32>
    %114 = arith.mulf %111, %101 : vector<8x64xf32>
    %115 = arith.mulf %110, %112 : vector<8x64xf32>
    %116 = arith.addf %114, %115 : vector<8x64xf32>
    %117 = math.tanh %116 : vector<8x64xf32>
    %118 = arith.mulf %113, %117 : vector<8x64xf32>
    %119 = vector.extract_strided_slice %10 {offsets = [48, 0], sizes = [8, 256], strides = [1, 1]} : vector<64x256xf32> to vector<8x256xf32>
    %cst_21 = arith.constant dense<0.000000e+00> : vector<8x256xf32>
    %120 = tpu.matmul %118, %1, %cst_21 {dimension_numbers = #tpu.dot_dimension_numbers<[1], [0], [0], [1], [0, 0, 1, 1], [], []>} : vector<8x64xf32>, vector<64x256xf32>, vector<8x256xf32> -> vector<8x256xf32>
    %121 = arith.addf %119, %120 : vector<8x256xf32>
    %122 = math.tanh %121 : vector<8x256xf32>
    %123 = arith.mulf %122, %19 : vector<8x256xf32>
    %124 = arith.addf %123, %22 : vector<8x256xf32>
    %125 = vector.extract_strided_slice %124 {offsets = [0, 0], sizes = [8, 64], strides = [1, 1]} : vector<8x256xf32> to vector<8x64xf32>
    %126 = vector.extract_strided_slice %124 {offsets = [0, 64], sizes = [8, 64], strides = [1, 1]} : vector<8x256xf32> to vector<8x64xf32>
    %127 = vector.extract_strided_slice %124 {offsets = [0, 128], sizes = [8, 64], strides = [1, 1]} : vector<8x256xf32> to vector<8x64xf32>
    %128 = vector.extract_strided_slice %124 {offsets = [0, 192], sizes = [8, 64], strides = [1, 1]} : vector<8x256xf32> to vector<8x64xf32>
    %129 = arith.mulf %126, %116 : vector<8x64xf32>
    %130 = arith.mulf %125, %127 : vector<8x64xf32>
    %131 = arith.addf %129, %130 : vector<8x64xf32>
    %132 = math.tanh %131 : vector<8x64xf32>
    %133 = arith.mulf %128, %132 : vector<8x64xf32>
    %134 = vector.extract_strided_slice %10 {offsets = [56, 0], sizes = [8, 256], strides = [1, 1]} : vector<64x256xf32> to vector<8x256xf32>
    %cst_22 = arith.constant dense<0.000000e+00> : vector<8x256xf32>
    %135 = tpu.matmul %133, %1, %cst_22 {dimension_numbers = #tpu.dot_dimension_numbers<[1], [0], [0], [1], [0, 0, 1, 1], [], []>} : vector<8x64xf32>, vector<64x256xf32>, vector<8x256xf32> -> vector<8x256xf32>
    %136 = arith.addf %134, %135 : vector<8x256xf32>
    %137 = math.tanh %136 : vector<8x256xf32>
    %138 = arith.mulf %137, %19 : vector<8x256xf32>
    %139 = arith.addf %138, %22 : vector<8x256xf32>
    %140 = vector.extract_strided_slice %139 {offsets = [0, 0], sizes = [8, 64], strides = [1, 1]} : vector<8x256xf32> to vector<8x64xf32>
    %141 = vector.extract_strided_slice %139 {offsets = [0, 64], sizes = [8, 64], strides = [1, 1]} : vector<8x256xf32> to vector<8x64xf32>
    %142 = vector.extract_strided_slice %139 {offsets = [0, 128], sizes = [8, 64], strides = [1, 1]} : vector<8x256xf32> to vector<8x64xf32>
    %143 = vector.extract_strided_slice %139 {offsets = [0, 192], sizes = [8, 64], strides = [1, 1]} : vector<8x256xf32> to vector<8x64xf32>
    %144 = arith.mulf %141, %131 : vector<8x64xf32>
    %145 = arith.mulf %140, %142 : vector<8x64xf32>
    %146 = arith.addf %144, %145 : vector<8x64xf32>
    %147 = math.tanh %146 : vector<8x64xf32>
    %148 = arith.mulf %143, %147 : vector<8x64xf32>
    %149 = vector.extract_strided_slice %10 {offsets = [56, 0], sizes = [8, 256], strides = [1, 1]} : vector<64x256xf32> to vector<8x256xf32>
    %cst_23 = arith.constant dense<0.000000e+00> : vector<8x256xf32>
    %150 = tpu.matmul %148, %1, %cst_23 {dimension_numbers = #tpu.dot_dimension_numbers<[1], [0], [0], [1], [0, 0, 1, 1], [], []>} : vector<8x64xf32>, vector<64x256xf32>, vector<8x256xf32> -> vector<8x256xf32>
    %151 = arith.addf %149, %150 : vector<8x256xf32>
    %152 = math.tanh %151 : vector<8x256xf32>
    %153 = arith.mulf %152, %19 : vector<8x256xf32>
    %154 = arith.addf %153, %22 : vector<8x256xf32>
    %155 = vector.extract_strided_slice %154 {offsets = [0, 0], sizes = [8, 64], strides = [1, 1]} : vector<8x256xf32> to vector<8x64xf32>
    %156 = vector.extract_strided_slice %154 {offsets = [0, 64], sizes = [8, 64], strides = [1, 1]} : vector<8x256xf32> to vector<8x64xf32>
    %157 = vector.extract_strided_slice %154 {offsets = [0, 128], sizes = [8, 64], strides = [1, 1]} : vector<8x256xf32> to vector<8x64xf32>
    %158 = vector.extract_strided_slice %154 {offsets = [0, 192], sizes = [8, 64], strides = [1, 1]} : vector<8x256xf32> to vector<8x64xf32>
    %159 = arith.mulf %156, %146 : vector<8x64xf32>
    %160 = arith.mulf %155, %157 : vector<8x64xf32>
    %161 = arith.addf %159, %160 : vector<8x64xf32>
    %162 = math.tanh %161 : vector<8x64xf32>
    %163 = arith.mulf %158, %162 : vector<8x64xf32>
    %164 = vector.extract_strided_slice %163 {offsets = [0, 32], sizes = [2, 32], strides = [1, 1]} : vector<8x64xf32> to vector<2x32xf32>
    %c0_24 = arith.constant 0 : index
    %c0_25 = arith.constant 0 : index
    %165 = vector.load %arg3[%c0_24, %c0_25] : memref<65x32xf32, #tpu.memory_space<vmem>>, vector<32x16xf32>
    %c32 = arith.constant 32 : index
    %c0_26 = arith.constant 0 : index
    %166 = vector.load %arg3[%c32, %c0_26] : memref<65x32xf32, #tpu.memory_space<vmem>>, vector<16x8xf32>
    %c48 = arith.constant 48 : index
    %c0_27 = arith.constant 0 : index
    %167 = vector.load %arg3[%c48, %c0_27] : memref<65x32xf32, #tpu.memory_space<vmem>>, vector<8x4xf32>
    %c56 = arith.constant 56 : index
    %c0_28 = arith.constant 0 : index
    %168 = vector.load %arg3[%c56, %c0_28] : memref<65x32xf32, #tpu.memory_space<vmem>>, vector<1x32xf32>
    %c57 = arith.constant 57 : index
    %c0_29 = arith.constant 0 : index
    %169 = vector.load %arg3[%c57, %c0_29] : memref<65x32xf32, #tpu.memory_space<vmem>>, vector<1x32xf32>
    %c58 = arith.constant 58 : index
    %c0_30 = arith.constant 0 : index
    %170 = vector.load %arg3[%c58, %c0_30] : memref<65x32xf32, #tpu.memory_space<vmem>>, vector<1x16xf32>
    %c59 = arith.constant 59 : index
    %c0_31 = arith.constant 0 : index
    %171 = vector.load %arg3[%c59, %c0_31] : memref<65x32xf32, #tpu.memory_space<vmem>>, vector<1x16xf32>
    %c60 = arith.constant 60 : index
    %c0_32 = arith.constant 0 : index
    %172 = vector.load %arg3[%c60, %c0_32] : memref<65x32xf32, #tpu.memory_space<vmem>>, vector<1x16xf32>
    %c61 = arith.constant 61 : index
    %c0_33 = arith.constant 0 : index
    %173 = vector.load %arg3[%c61, %c0_33] : memref<65x32xf32, #tpu.memory_space<vmem>>, vector<1x8xf32>
    %c62 = arith.constant 62 : index
    %c0_34 = arith.constant 0 : index
    %174 = vector.load %arg3[%c62, %c0_34] : memref<65x32xf32, #tpu.memory_space<vmem>>, vector<1x8xf32>
    %c63 = arith.constant 63 : index
    %c0_35 = arith.constant 0 : index
    %175 = vector.load %arg3[%c63, %c0_35] : memref<65x32xf32, #tpu.memory_space<vmem>>, vector<1x8xf32>
    %c64 = arith.constant 64 : index
    %c0_36 = arith.constant 0 : index
    %176 = vector.load %arg3[%c64, %c0_36] : memref<65x32xf32, #tpu.memory_space<vmem>>, vector<1x4xf32>
    %cst_37 = arith.constant dense<0.000000e+00> : vector<32xf32>
    %177 = vector.multi_reduction <add>, %164, %cst_37 [0] : vector<2x32xf32> to vector<32xf32>
    %178 = vector.shape_cast %177 : vector<32xf32> to vector<1x32xf32>
    %cst_38 = arith.constant 2.000000e+00 : f32
    %179 = vector.broadcast %cst_38 : f32 to vector<1x32xf32>
    %180 = arith.divf %178, %179 : vector<1x32xf32>
    %181 = vector.broadcast %180 : vector<1x32xf32> to vector<2x32xf32>
    %182 = arith.subf %164, %181 : vector<2x32xf32>
    %183 = arith.mulf %182, %182 : vector<2x32xf32>
    %cst_39 = arith.constant dense<0.000000e+00> : vector<32xf32>
    %184 = vector.multi_reduction <add>, %183, %cst_39 [0] : vector<2x32xf32> to vector<32xf32>
    %185 = vector.shape_cast %184 : vector<32xf32> to vector<1x32xf32>
    %cst_40 = arith.constant 2.000000e+00 : f32
    %186 = vector.broadcast %cst_40 : f32 to vector<1x32xf32>
    %187 = arith.divf %185, %186 : vector<1x32xf32>
    %188 = vector.broadcast %180 : vector<1x32xf32> to vector<2x32xf32>
    %189 = arith.subf %164, %188 : vector<2x32xf32>
    %cst_41 = arith.constant 9.99999974E-6 : f32
    %190 = vector.broadcast %cst_41 : f32 to vector<1x32xf32>
    %191 = arith.addf %187, %190 : vector<1x32xf32>
    %192 = math.rsqrt %191 : vector<1x32xf32>
    %193 = vector.broadcast %192 : vector<1x32xf32> to vector<2x32xf32>
    %194 = arith.mulf %189, %193 : vector<2x32xf32>
    %195 = vector.broadcast %168 : vector<1x32xf32> to vector<2x32xf32>
    %196 = arith.mulf %194, %195 : vector<2x32xf32>
    %197 = vector.broadcast %169 : vector<1x32xf32> to vector<2x32xf32>
    %198 = arith.addf %196, %197 : vector<2x32xf32>
    %cst_42 = arith.constant dense<0.000000e+00> : vector<2x16xf32>
    %199 = tpu.matmul %198, %165, %cst_42 {dimension_numbers = #tpu.dot_dimension_numbers<[1], [0], [0], [1], [0, 0, 1, 1], [], []>} : vector<2x32xf32>, vector<32x16xf32>, vector<2x16xf32> -> vector<2x16xf32>
    %200 = vector.broadcast %170 : vector<1x16xf32> to vector<2x16xf32>
    %201 = arith.addf %199, %200 : vector<2x16xf32>
    %cst_43 = arith.constant 0.000000e+00 : f32
    %202 = vector.broadcast %cst_43 : f32 to vector<2x16xf32>
    %203 = arith.maximumf %201, %202 : vector<2x16xf32>
    %cst_44 = arith.constant dense<0.000000e+00> : vector<16xf32>
    %204 = vector.multi_reduction <add>, %203, %cst_44 [0] : vector<2x16xf32> to vector<16xf32>
    %205 = vector.shape_cast %204 : vector<16xf32> to vector<1x16xf32>
    %cst_45 = arith.constant 2.000000e+00 : f32
    %206 = vector.broadcast %cst_45 : f32 to vector<1x16xf32>
    %207 = arith.divf %205, %206 : vector<1x16xf32>
    %208 = vector.broadcast %207 : vector<1x16xf32> to vector<2x16xf32>
    %209 = arith.subf %203, %208 : vector<2x16xf32>
    %210 = arith.mulf %209, %209 : vector<2x16xf32>
    %cst_46 = arith.constant dense<0.000000e+00> : vector<16xf32>
    %211 = vector.multi_reduction <add>, %210, %cst_46 [0] : vector<2x16xf32> to vector<16xf32>
    %212 = vector.shape_cast %211 : vector<16xf32> to vector<1x16xf32>
    %cst_47 = arith.constant 2.000000e+00 : f32
    %213 = vector.broadcast %cst_47 : f32 to vector<1x16xf32>
    %214 = arith.divf %212, %213 : vector<1x16xf32>
    %215 = vector.broadcast %207 : vector<1x16xf32> to vector<2x16xf32>
    %216 = arith.subf %203, %215 : vector<2x16xf32>
    %cst_48 = arith.constant 9.99999974E-6 : f32
    %217 = vector.broadcast %cst_48 : f32 to vector<1x16xf32>
    %218 = arith.addf %214, %217 : vector<1x16xf32>
    %219 = math.rsqrt %218 : vector<1x16xf32>
    %220 = vector.broadcast %219 : vector<1x16xf32> to vector<2x16xf32>
    %221 = arith.mulf %216, %220 : vector<2x16xf32>
    %222 = vector.broadcast %171 : vector<1x16xf32> to vector<2x16xf32>
    %223 = arith.mulf %221, %222 : vector<2x16xf32>
    %224 = vector.broadcast %172 : vector<1x16xf32> to vector<2x16xf32>
    %225 = arith.addf %223, %224 : vector<2x16xf32>
    %cst_49 = arith.constant dense<0.000000e+00> : vector<2x8xf32>
    %226 = tpu.matmul %225, %166, %cst_49 {dimension_numbers = #tpu.dot_dimension_numbers<[1], [0], [0], [1], [0, 0, 1, 1], [], []>} : vector<2x16xf32>, vector<16x8xf32>, vector<2x8xf32> -> vector<2x8xf32>
    %227 = vector.broadcast %173 : vector<1x8xf32> to vector<2x8xf32>
    %228 = arith.addf %226, %227 : vector<2x8xf32>
    %cst_50 = arith.constant 0.000000e+00 : f32
    %229 = vector.broadcast %cst_50 : f32 to vector<2x8xf32>
    %230 = arith.maximumf %228, %229 : vector<2x8xf32>
    %cst_51 = arith.constant dense<0.000000e+00> : vector<8xf32>
    %231 = vector.multi_reduction <add>, %230, %cst_51 [0] : vector<2x8xf32> to vector<8xf32>
    %232 = vector.shape_cast %231 : vector<8xf32> to vector<1x8xf32>
    %cst_52 = arith.constant 2.000000e+00 : f32
    %233 = vector.broadcast %cst_52 : f32 to vector<1x8xf32>
    %234 = arith.divf %232, %233 : vector<1x8xf32>
    %235 = vector.broadcast %234 : vector<1x8xf32> to vector<2x8xf32>
    %236 = arith.subf %230, %235 : vector<2x8xf32>
    %237 = arith.mulf %236, %236 : vector<2x8xf32>
    %cst_53 = arith.constant dense<0.000000e+00> : vector<8xf32>
    %238 = vector.multi_reduction <add>, %237, %cst_53 [0] : vector<2x8xf32> to vector<8xf32>
    %239 = vector.shape_cast %238 : vector<8xf32> to vector<1x8xf32>
    %cst_54 = arith.constant 2.000000e+00 : f32
    %240 = vector.broadcast %cst_54 : f32 to vector<1x8xf32>
    %241 = arith.divf %239, %240 : vector<1x8xf32>
    %242 = vector.broadcast %234 : vector<1x8xf32> to vector<2x8xf32>
    %243 = arith.subf %230, %242 : vector<2x8xf32>
    %cst_55 = arith.constant 9.99999974E-6 : f32
    %244 = vector.broadcast %cst_55 : f32 to vector<1x8xf32>
    %245 = arith.addf %241, %244 : vector<1x8xf32>
    %246 = math.rsqrt %245 : vector<1x8xf32>
    %247 = vector.broadcast %246 : vector<1x8xf32> to vector<2x8xf32>
    %248 = arith.mulf %243, %247 : vector<2x8xf32>
    %249 = vector.broadcast %174 : vector<1x8xf32> to vector<2x8xf32>
    %250 = arith.mulf %248, %249 : vector<2x8xf32>
    %251 = vector.broadcast %175 : vector<1x8xf32> to vector<2x8xf32>
    %252 = arith.addf %250, %251 : vector<2x8xf32>
    %cst_56 = arith.constant dense<0.000000e+00> : vector<2x4xf32>
    %253 = tpu.matmul %252, %167, %cst_56 {dimension_numbers = #tpu.dot_dimension_numbers<[1], [0], [0], [1], [0, 0, 1, 1], [], []>} : vector<2x8xf32>, vector<8x4xf32>, vector<2x4xf32> -> vector<2x4xf32>
    %254 = vector.broadcast %176 : vector<1x4xf32> to vector<2x4xf32>
    %255 = arith.addf %253, %254 : vector<2x4xf32>
    %c0_57 = arith.constant 0 : index
    %c0_58 = arith.constant 0 : index
    %256 = vector.load %arg4[%c0_57, %c0_58] : memref<2x4xf32, #tpu.memory_space<vmem>>, vector<2x4xf32>
    tpu.vector_store %arg4[%c0_57, %c0_58], %255 {strides = array<i32>} : memref<2x4xf32, #tpu.memory_space<vmem>>, vector<2x4xf32>,
    return
  }
}

</mosaic_0001>

<bundles_post_ra>
// kernel: fwd.1
= control target key start
LH: loop header
LB: loop body
LE: loop exit
PB: predicated region body
PF: predicated region fallthrough
CT: control target
= control target key end

     0   :  { %s1790_s21 = smov 32   ;;  %v1791_v6 = vmov 0.0   ;;  %vm63_vm0 = vcmask 130048   ;;  %s2228_s0 = inlined_call_operand.vmem [shape: f32[64,16], index: 0, kind: input, shape index: {}]   ;;  %s2229_s1 = inlined_call_operand.vmem [shape: f32[32,32], index: 1, kind: input, shape index: {}]   ;;  %s2230_s2 = inlined_call_operand.vmem [shape: f32[81,256], index: 2, kind: input, shape index: {}]   ;;  %s2231_s3 = inlined_call_operand.vmem [shape: f32[65,32], index: 3, kind: input, shape index: {}]   ;;  %s2232_s4 = inlined_call_operand.hbm [shape: f32[2,4], index: 4, kind: output, shape index: {}]  }
   0x1   :  { %v41_v0 = vld [vmem:[%s2229_s1 + $0x8] sm:$0xff]  ;;  %v21_v2 = vld [vmem:[%s2230_s2 + $0x18] sm:$0xff]  ;;  %v18_v4 = vld [vmem:[%s2230_s2] sm:$0xff]  ;;  %152 = vmatprep.mubr.f32.mxu1 %v1791_v6  ;;  %398 = vmatprep.mubr.f32.mxu0 %v1791_v6 }
   0x2   :  { %v19_v1 = vld [vmem:[%s2230_s2 + $0x8] sm:$0xff]  ;;  %215 = vrot.lane.b32.xlu0 %v41_v0, %s1790_s21  ;;  %v20_v5 = vld [vmem:[%s2230_s2 + $0x10] sm:$0xff]  ;;  %v25_v9 = vld [vmem:[%s2230_s2 + $0x38] sm:$0xff] }
   0x3   :  { %v1513_v3 = vpack.c.bf16 %v21_v2, %v19_v1  ;;  %v1515_v7 = vpack.c.bf16 %v20_v5, %v18_v4  ;;  %v23_v8 = vld [vmem:[%s2230_s2 + $0x28] sm:$0xff]  ;;  %v22_v10 = vld [vmem:[%s2230_s2 + $0x20] sm:$0xff]  ;;  %v24_v12 = vld [vmem:[%s2230_s2 + $0x30] sm:$0xff] }
   0x4   :  { %v1850_v11 = vpack.c.bf16 %v25_v9, %v23_v8  ;;  %v44_v13 = vld [vmem:[%s2228_s0] sm:$0xff]  ;;  %v1858_v14 = vpack.c.bf16 %v24_v12, %v22_v10  ;;  %v27_v15 = vld [vmem:[%s2230_s2 + $0x48] sm:$0xff]  ;;  %v29_v16 = vld [vmem:[%s2230_s2 + $0x58] sm:$0xff] }
   0x5   :  { %1514 = vmatprep.subr.bf16.mxu1 %v1513_v3  ;;  %v1867_v17 = vpack.c.bf16 %v29_v16, %v27_v15  ;;  %v26_v18 = vld [vmem:[%s2230_s2 + $0x40] sm:$0xff]  ;;  %v28_v19 = vld [vmem:[%s2230_s2 + $0x50] sm:$0xff]  ;;  %v31_v20 = vld [vmem:[%s2230_s2 + $0x68] sm:$0xff] }
   0x6   :  { %1516 = vmatpush1.bf16.msra.mxu1 %v1515_v7  ;;  %1534 = vmatprep.subr.bf16.mxu0 %v1850_v11  ;;  %v33_v21 = vld [vmem:[%s2230_s2 + $0x78] sm:$0xff]  ;;  %v45_v22 = vld [vmem:[%s2228_s0 + $0x8] sm:$0xff]  ;;  %v1890_v23 = vpack.c.bf16 %v28_v19, %v26_v18  ;;  %v30_v25 = vld [vmem:[%s2230_s2 + $0x60] sm:$0xff] }
   0x7   :  { %1518 = vmatprep.subr.bf16.mxu1 %v1850_v11  ;;  %1536 = vmatpush1.bf16.msra.mxu0 %v1858_v14  ;;  %v1893_v24 = vpack.c.bf16 %v33_v21, %v31_v20  ;;  %v32_v26 = vld [vmem:[%s2230_s2 + $0x70] sm:$0xff]  ;;  %v43_v27 = vld [vmem:[%s2229_s1 + $0x18] sm:$0xff]  ;;  %v35_v28 = vld [vmem:[%s2230_s2 + $0x88] sm:$0xff] }
   0x8   :  { %1538 = vmatprep.subr.bf16.mxu0 %v1867_v17  ;;  %v37_v29 = vld [vmem:[%s2230_s2 + $0x98] sm:$0xff]  ;;  %221 = vrot.lane.b32.xlu0 %v43_v27, %s1790_s21 }
   0x9   :  { %1451 = vmatmul.mubr.msk.f32.vlgmr.msra.gmra.mrb[0].mxu1 %vm63_vm0, %v44_v13 }
   0xa   :  { %1520 = vmatpush1.bf16.msra.mxu1 %v1858_v14  ;;  %158 = vmatprep.mubr.f32.mxu1 %v1791_v6 }
   0xb   :  { %1522 = vmatprep.subr.bf16.mxu1 %v1867_v17  ;;  %1540 = vmatpush1.bf16.msra.mxu0 %v1890_v23 }
   0xc   :  { %1542 = vmatprep.subr.bf16.mxu0 %v1893_v24 }
   0xd   :  { %1452 = vmatmul.mubr.msk.f32.gmra.mrb[2].mxu1 %vm63_vm0, %v45_v22 }
   0xe   :  { %9 = vsyncpa [#allocation3], 0  ;;  %164 = vmatprep.mubr.f32.mxu1 %v1791_v6  ;;  %v46_v30 = vld [vmem:[%s2228_s0 + $0x10] sm:$0xff]  ;;  %1524 = vmatpush1.bf16.msra.mxu1 %v1890_v23  ;;  %v1919_v31 = vpack.c.bf16 %v32_v26, %v30_v25  ;;  %v1922_v32 = vpack.c.bf16 %v37_v29, %v35_v28  ;;  %v34_v33 = vld [vmem:[%s2230_s2 + $0x80] sm:$0xff]  ;;  %vm218_vm1 = vcmask 261120   ;;  %vm225_vm2 = vcmask 523264  }
   0xf   :  { %1526 = vmatprep.subr.bf16.mxu1 %v1893_v24  ;;  %v36_v34 = vld [vmem:[%s2230_s2 + $0x90] sm:$0xff]  ;;  %v47_v35 = vld [vmem:[%s2228_s0 + $0x18] sm:$0xff]  ;;  %v48_v37 = vld [vmem:[%s2228_s0 + $0x20] sm:$0xff]  ;;  %s1792_s29 = smov 64   ;;  %v53_v61 = vlaneseq  ;;  %v1793_v12 = vmov 0.5   ;;  %s1794_s6 = smov 96  }
  0x10   :  { %1544 = vmatpush1.bf16.msra.mxu0 %v1919_v31  ;;  %v1938_v36 = vpack.c.bf16 %v36_v34, %v34_v33  ;;  %v49_v38 = vld [vmem:[%s2228_s0 + $0x28] sm:$0xff]  ;;  %v50_v39 = vld [vmem:[%s2228_s0 + $0x30] sm:$0xff]  ;;  %v51_v40 = vld [vmem:[%s2228_s0 + $0x38] sm:$0xff]  ;;  %vm1796_vm4 = vmmov 0   ;;  %vm1093_vm5 = vcmask 1042176   ;;  %vm1214_vm6 = vcmask 123904  }
  0x11   :  { %1453 = vmatmul.mubr.msk.f32.gmra.mrb[4].mxu1 %vm63_vm0, %v46_v30  ;;  %1546 = vmatprep.subr.bf16.mxu0 %v1922_v32  ;;  %v40_v41 = vld [vmem:[%s2229_s1] sm:$0xff]  ;;  %v42_v44 = vld [vmem:[%s2229_s1 + $0x10] sm:$0xff]  ;;  %v54_v62 = vshrl.u32 %v53_v61, 7  ;;  %v202_v8 = vand.u32 127, %v53_v61  ;;  %vm1324_vm7 = vcmask 58368   ;;  %vm1360_vm8 = vcmask 64512  }
  0x12   :  { %170 = vmatprep.mubr.f32.mxu1 %v1791_v6  ;;  %1528 = vmatpush1.bf16.msra.mxu1 %v1919_v31  ;;  %v1450_v0 = vld [vmem:[%s2230_s2 + $0xa0] ss:$8 sm:$0x3]  ;;  %s1797_s8 = smov [#allocation2]   ;;  %vm1434_vm9 = vcmask 25600  }
  0x13   :  { %1530 = vmatprep.subr.bf16.mxu1 %v1922_v32  ;;  %v55_v63 = vsub.s32 0, %v54_v62  ;;  %v59_v1 = vsub.s32 1, %v54_v62  ;;  %v203_v10 = vadd.s32 128, %v202_v8  ;;  %s1442_s9 = sshll.u32 %s1797_s8, 4  ;;  %s1443_s9 = int_to_ptr.vmem [resolvable:$true] %s1442_s9 }
  0x14   :  { %1548 = vmatpush1.bf16.msra.mxu0 %v1938_v36  ;;  %s1766_s10 = scalar_lea.vmem %s1443_s9, 32  ;;  %p1771_p1 = scmp.lt.s32.totalorder %s1443_s9, %s1443_s9 }
  0x15   :  { %1454 = vmatmul.mubr.msk.f32.gmra.mrb[6].mxu1 %vm63_vm0, %v47_v35  ;;  %1550 = vmatprep.subr.bf16.mxu0 %v1850_v11  ;;  %v2020_v2 = vrot.slane %v1450_v0, %v55_v63  ;;  %v2022_v3 = vrot.slane %v1450_v0, %v59_v1  ;;  %vm207_vm3 = vcmp.lt.s32.totalorder %v203_v10, 192  ;;  %p1767_p0 = scmp.ne.s32.totalorder %s1443_s9, %s1766_s10  ;;  %p1772_p2 = scmp.lt.s32.totalorder %s1766_s10, %s1766_s10 }
  0x16   :  { %176 = vmatprep.mubr.f32.mxu1 %v1791_v6  ;;  %1532 = vmatpush1.bf16.msra.mxu1 %v1938_v36  ;;  %v2026_v13 = vsel %vm207_vm3, 1.0, %v1793_v12  ;;  %v2028_v19 = vsel %vm207_vm3, 0.0, %v1793_v12 }
  0x17   :  { %1630 = vmatprep.subr.bf16.mxu1 %v1850_v11  ;;  %p1773_p3 = por %p1772_p2, %p1771_p1 }
  0x19   :  { %1455 = vmatmul.mubr.msk.f32.gmra.mrb[8].mxu1 %vm63_vm0, %v48_v37  ;;  %p1774_p4 = pnand %p1773_p3, %p1767_p0 }
  0x1a   :  { %182 = vmatprep.mubr.f32.mxu1 %v1791_v6 }
  0x1d   :  { %1456 = vmatmul.mubr.msk.f32.gmra.mrb[10].mxu1 %vm63_vm0, %v49_v38 }
  0x1e   :  { %188 = vmatprep.mubr.f32.mxu1 %v1791_v6 }
  0x21   :  { %1457 = vmatmul.mubr.msk.f32.gmra.mrb[12].mxu1 %vm63_vm0, %v50_v39 }
  0x22   :  { %194 = vmatprep.mubr.f32.mxu1 %v1791_v6 }
  0x25   :  { %1458 = vmatmul.mubr.msk.f32.gmra.mrb[14].mxu1 %vm63_vm0, %v51_v40 }
  0x26   :  { %293 = vmatprep.mubr.f32.mxu1 %v1791_v6 }
  0x74   :  { %v1970_v42 = vpop.permute.xlu0 %215 }
  0x75   :  { %v219_v43 = vsel %vm218_vm1, %v40_v41, %v1970_v42 }
  0x76   :  { %1459 = vmatmul.mubr.msk.f32.vlgmr.msra.gmra.mrb[0].mxu1 %vm225_vm2, %v219_v43 }
  0x77   :  { %1632 = vmatpush1.bf16.msra.mxu1 %v1858_v14  ;;  %960 = vmatprep.mubr.f32.mxu1 %v1791_v6 }
  0x78   :  { %1634 = vmatprep.subr.bf16.mxu1 %v1867_v17 }
  0x7a   :  { %v222_v45 = vpop.permute.xlu0 %221 }
  0x7b   :  { %1636 = vmatpush1.bf16.msra.mxu1 %v1890_v23  ;;  %v224_v46 = vsel %vm218_vm1, %v42_v44, %v222_v45 }
  0x7c   :  { %1638 = vmatprep.subr.bf16.mxu1 %v1893_v24  ;;  %309 = vrot.lane.b32.xlu1 %v224_v46, %s1792_s29 }
  0x7f   :  { %1640 = vmatpush1.bf16.msra.mxu1 %v1919_v31 }
  0x80   :  { %1642 = vmatprep.subr.bf16.mxu1 %v1922_v32 }
  0x83   :  { %1644 = vmatpush1.bf16.msra.mxu1 %v1938_v36 }
  0x84   :  { %1646 = vmatprep.subr.bf16.mxu1 %v1850_v11 }
  0xe0   :  { %v1989_v47 = vpop.f32.mrb[2].mxu1 }
  0xe1   :  { %v1991_v48 = vpop.f32.mrb[3].mxu1  ;;  %v161_v39 = vadd.f32 %v1989_v47, %v2020_v2 }
  0xe2   :  { %v163_v40 = vadd.f32 %v1991_v48, %v2022_v3 }
  0xe4   :  { %v1993_v49 = vpop.f32.mrb[4].mxu1 }
  0xe5   :  { %v1995_v50 = vpop.f32.mrb[5].mxu1  ;;  %v167_v10 = vadd.f32 %v1993_v49, %v2020_v2 }
  0xe6   :  { %v169_v12 = vadd.f32 %v1995_v50, %v2022_v3 }
  0xe8   :  { %v1997_v51 = vpop.f32.mrb[6].mxu1 }
  0xe9   :  { %v1999_v52 = vpop.f32.mrb[7].mxu1 }
  0xec   :  { %v2001_v53 = vpop.f32.mrb[8].mxu1 }
  0xed   :  { %v2003_v54 = vpop.f32.mrb[9].mxu1 }
  0xee   :  { %v310_v26 = vpop.permute.xlu1 %309 }
  0xf0   :  { %v2005_v55 = vpop.f32.mrb[10].mxu1 }
  0xf1   :  { %v2007_v56 = vpop.f32.mrb[11].mxu1 }
  0xf4   :  { %v2009_v57 = vpop.f32.mrb[12].mxu1 }
  0xf5   :  { %v2011_v58 = vpop.f32.mrb[13].mxu1 }
  0xf8   :  { %v2013_v59 = vpop.f32.mrb[14].mxu1 }
  0xf9   :  { %v2015_v60 = vpop.f32.mrb[15].mxu1 }
 0x149   :  { %v295_v4 = vpop.f32.mrb[0].mxu1 }
 0x14a   :  { %v1670_v5 = vadd.f32 %v295_v4, %v2020_v2  ;;  %v297_v7 = vpop.f32.mrb[1].mxu1 }
 0x14b   :  { %v1671_v9 = vadd.f32 %v297_v7, %v2022_v3 }
 0x14c   :  { %1706 = vtanh.f32 %v1670_v5 }
 0x14d   :  { %1708 = vtanh.f32 %v1671_v9 }
 0x156   :  { %v1707_v15 = vpop.eup %1706 }
 0x157   :  { %v1709_v16 = vpop.eup %1708  ;;  %v304_v18 = vmul.f32 0.5, %v1707_v15 }
 0x158   :  { %v305_v20 = vmul.f32 %v1709_v16, %v2026_v13 }
 0x159   :  { %v306_v21 = vadd.f32 0.5, %v304_v18 }
 0x15a   :  { %v307_v22 = vadd.f32 %v305_v20, %v2028_v19 }
 0x15b   :  { %v312_v27 = vmul.f32 %v310_v26, %v306_v21 }
 0x15c   :  { %v313_v25 = vmul.f32 %v307_v22, %v306_v21 }
 0x15e   :  { %315 = vrot.lane.b32.xlu1 %v313_v25, %s1792_s29 }
 0x1d0   :  { %v316_v28 = vpop.permute.xlu1 %315 }
 0x1d1   :  { %v318_v29 = vadd.f32 %v316_v28, %v312_v27 }
 0x1d3   :  { %1710 = vtanh.f32 %v318_v29  ;;  %327 = vrot.lane.b32.xlu1 %v318_v29, %s1792_s29 }
 0x1dd   :  { %v1711_v30 = vpop.eup %1710 }
 0x1de   :  { %v320_v33 = vmul.f32 %v1711_v30, %v307_v22 }
 0x1e0   :  { %322 = vrot.lane.b32.xlu0 %v320_v33, %s1792_s29 }
 0x245   :  { %v328_v34 = vpop.permute.xlu1 %327 }
 0x246   :  { %v330_v35 = vsel %vm218_vm1, %v328_v34, %v222_v45 }
 0x247   :  { %414 = vrot.lane.b32.xlu0 %v330_v35, %s1792_s29 }
 0x252   :  { %v323_v37 = vpop.permute.xlu0 %322 }
 0x253   :  { %v325_v38 = vsel %vm218_vm1, %v323_v37, %v1970_v42  ;;  %v173_v37 = vadd.f32 %v1997_v51, %v2020_v2 }
 0x254   :  { %1460 = vmatmul.mubr.msk.f32.vlgmr.msra.gmra.mrb[0].mxu0 %vm225_vm2, %v325_v38  ;;  %v175_v38 = vadd.f32 %v1999_v52, %v2022_v3 }
 0x255   :  { %1552 = vmatpush1.bf16.msra.mxu0 %v1858_v14  ;;  %495 = vmatprep.mubr.f32.mxu0 %v1791_v6 }
 0x256   :  { %1554 = vmatprep.subr.bf16.mxu0 %v1867_v17 }
 0x259   :  { %1556 = vmatpush1.bf16.msra.mxu0 %v1890_v23 }
 0x25a   :  { %1558 = vmatprep.subr.bf16.mxu0 %v1893_v24 }
 0x25d   :  { %1560 = vmatpush1.bf16.msra.mxu0 %v1919_v31 }
 0x25e   :  { %1562 = vmatprep.subr.bf16.mxu0 %v1922_v32 }
 0x261   :  { %1564 = vmatpush1.bf16.msra.mxu0 %v1938_v36 }
 0x262   :  { %1566 = vmatprep.subr.bf16.mxu0 %v1850_v11 }
 0x2b9   :  { %v415_v47 = vpop.permute.xlu0 %414 }
 0x327   :  { %v400_v41 = vpop.f32.mrb[0].mxu0 }
 0x328   :  { %v405_v42 = vadd.f32 %v400_v41, %v161_v39  ;;  %v402_v43 = vpop.f32.mrb[1].mxu0 }
 0x329   :  { %v406_v44 = vadd.f32 %v402_v43, %v163_v40 }
 0x32a   :  { %1712 = vtanh.f32 %v405_v42 }
 0x32b   :  { %1714 = vtanh.f32 %v406_v44 }
 0x334   :  { %v1713_v45 = vpop.eup %1712 }
 0x335   :  { %v1715_v46 = vpop.eup %1714  ;;  %v409_v61 = vmul.f32 0.5, %v1713_v45 }
 0x336   :  { %v410_v62 = vmul.f32 %v1715_v46, %v2026_v13 }
 0x337   :  { %v411_v63 = vadd.f32 0.5, %v409_v61 }
 0x338   :  { %v412_v0 = vadd.f32 %v410_v62, %v2028_v19 }
 0x339   :  { %v417_v4 = vmul.f32 %v415_v47, %v411_v63 }
 0x33a   :  { %v418_v1 = vmul.f32 %v412_v0, %v411_v63 }
 0x33c   :  { %420 = vrot.lane.b32.xlu1 %v418_v1, %s1792_s29 }
 0x3ae   :  { %v421_v48 = vpop.permute.xlu1 %420 }
 0x3af   :  { %v423_v5 = vadd.f32 %v421_v48, %v417_v4  ;;  %v179_v48 = vadd.f32 %v2001_v53, %v2020_v2 }
 0x3b1   :  { %1716 = vtanh.f32 %v423_v5 }
 0x3bb   :  { %v1717_v7 = vpop.eup %1716 }
 0x3bc   :  { %v425_v8 = vmul.f32 %v1717_v7, %v412_v0 }
 0x3be   :  { %427 = vrot.lane.b32.xlu0 %v425_v8, %s1792_s29 }
 0x430   :  { %v428_v9 = vpop.permute.xlu0 %427 }
 0x431   :  { %1461 = vmatmul.mubr.msk.f32.vlgmr.msra.gmra.mrb[2].mxu0 %vm225_vm2, %v428_v9 }
 0x432   :  { %1568 = vmatpush1.bf16.msra.mxu0 %v1858_v14  ;;  %588 = vmatprep.mubr.f32.mxu0 %v1791_v6 }
 0x433   :  { %1570 = vmatprep.subr.bf16.mxu0 %v1867_v17 }
 0x436   :  { %1572 = vmatpush1.bf16.msra.mxu0 %v1890_v23 }
 0x437   :  { %1574 = vmatprep.subr.bf16.mxu0 %v1893_v24 }
 0x43a   :  { %1576 = vmatpush1.bf16.msra.mxu0 %v1919_v31 }
 0x43b   :  { %1578 = vmatprep.subr.bf16.mxu0 %v1922_v32 }
 0x43e   :  { %1580 = vmatpush1.bf16.msra.mxu0 %v1938_v36 }
 0x43f   :  { %1582 = vmatprep.subr.bf16.mxu0 %v1850_v11 }
 0x504   :  { %v497_v15 = vpop.f32.mrb[2].mxu0 }
 0x505   :  { %v502_v16 = vadd.f32 %v497_v15, %v167_v10  ;;  %v499_v18 = vpop.f32.mrb[3].mxu0 }
 0x506   :  { %v503_v20 = vadd.f32 %v499_v18, %v169_v12 }
 0x507   :  { %1718 = vtanh.f32 %v502_v16 }
 0x508   :  { %1720 = vtanh.f32 %v503_v20 }
 0x511   :  { %v1719_v21 = vpop.eup %1718 }
 0x512   :  { %v1721_v22 = vpop.eup %1720  ;;  %v506_v25 = vmul.f32 0.5, %v1719_v21 }
 0x513   :  { %v507_v26 = vmul.f32 %v1721_v22, %v2026_v13 }
 0x514   :  { %v508_v27 = vadd.f32 0.5, %v506_v25 }
 0x515   :  { %v509_v28 = vadd.f32 %v507_v26, %v2028_v19 }
 0x516   :  { %v510_v49 = vmul.f32 %v508_v27, %v423_v5  ;;  %v181_v5 = vadd.f32 %v2003_v54, %v2022_v3 }
 0x517   :  { %v511_v29 = vmul.f32 %v509_v28, %v508_v27 }
 0x519   :  { %513 = vrot.lane.b32.xlu1 %v511_v29, %s1792_s29  ;;  %v187_v29 = vadd.f32 %v2007_v56, %v2022_v3 }
 0x58b   :  { %v514_v30 = vpop.permute.xlu1 %513 }
 0x58c   :  { %v516_v50 = vadd.f32 %v514_v30, %v510_v49 }
 0x58e   :  { %1722 = vtanh.f32 %v516_v50 }
 0x598   :  { %v1723_v33 = vpop.eup %1722 }
 0x599   :  { %v518_v34 = vmul.f32 %v1723_v33, %v509_v28  ;;  %v185_v28 = vadd.f32 %v2005_v55, %v2020_v2 }
 0x59b   :  { %520 = vrot.lane.b32.xlu0 %v518_v34, %s1792_s29 }
 0x60d   :  { %v521_v35 = vpop.permute.xlu0 %520 }
 0x60e   :  { %1462 = vmatmul.mubr.msk.f32.vlgmr.msra.gmra.mrb[4].mxu0 %vm225_vm2, %v521_v35 }
 0x60f   :  { %1584 = vmatpush1.bf16.msra.mxu0 %v1858_v14  ;;  %681 = vmatprep.mubr.f32.mxu0 %v1791_v6 }
 0x610   :  { %1586 = vmatprep.subr.bf16.mxu0 %v1867_v17 }
 0x613   :  { %1588 = vmatpush1.bf16.msra.mxu0 %v1890_v23 }
 0x614   :  { %1590 = vmatprep.subr.bf16.mxu0 %v1893_v24 }
 0x617   :  { %1592 = vmatpush1.bf16.msra.mxu0 %v1919_v31 }
 0x618   :  { %1594 = vmatprep.subr.bf16.mxu0 %v1922_v32 }
 0x61b   :  { %1596 = vmatpush1.bf16.msra.mxu0 %v1938_v36 }
 0x61c   :  { %1598 = vmatprep.subr.bf16.mxu0 %v1850_v11 }
 0x6e1   :  { %v590_v39 = vpop.f32.mrb[4].mxu0 }
 0x6e2   :  { %v595_v40 = vadd.f32 %v590_v39, %v173_v37  ;;  %v592_v41 = vpop.f32.mrb[5].mxu0 }
 0x6e3   :  { %v596_v42 = vadd.f32 %v592_v41, %v175_v38 }
 0x6e4   :  { %1724 = vtanh.f32 %v595_v40 }
 0x6e5   :  { %1726 = vtanh.f32 %v596_v42 }
 0x6ee   :  { %v1725_v43 = vpop.eup %1724 }
 0x6ef   :  { %v1727_v44 = vpop.eup %1726  ;;  %v599_v45 = vmul.f32 0.5, %v1725_v43 }
 0x6f0   :  { %v600_v46 = vmul.f32 %v1727_v44, %v2026_v13 }
 0x6f1   :  { %v601_v61 = vadd.f32 0.5, %v599_v45 }
 0x6f2   :  { %v602_v62 = vadd.f32 %v600_v46, %v2028_v19  ;;  %v191_v46 = vadd.f32 %v2009_v57, %v2020_v2 }
 0x6f3   :  { %v603_v51 = vmul.f32 %v601_v61, %v516_v50 }
 0x6f4   :  { %v604_v63 = vmul.f32 %v602_v62, %v601_v61  ;;  %v193_v61 = vadd.f32 %v2011_v58, %v2022_v3 }
 0x6f6   :  { %606 = vrot.lane.b32.xlu1 %v604_v63, %s1792_s29 }
 0x768   :  { %v607_v0 = vpop.permute.xlu1 %606 }
 0x769   :  { %v609_v52 = vadd.f32 %v607_v0, %v603_v51 }
 0x76b   :  { %1728 = vtanh.f32 %v609_v52 }
 0x775   :  { %v1729_v1 = vpop.eup %1728 }
 0x776   :  { %v611_v47 = vmul.f32 %v1729_v1, %v602_v62 }
 0x778   :  { %613 = vrot.lane.b32.xlu0 %v611_v47, %s1792_s29 }
 0x7ea   :  { %v614_v4 = vpop.permute.xlu0 %613 }
 0x7eb   :  { %1463 = vmatmul.mubr.msk.f32.vlgmr.msra.gmra.mrb[6].mxu0 %vm225_vm2, %v614_v4 }
 0x7ec   :  { %1600 = vmatpush1.bf16.msra.mxu0 %v1858_v14  ;;  %774 = vmatprep.mubr.f32.mxu0 %v1791_v6 }
 0x7ed   :  { %1602 = vmatprep.subr.bf16.mxu0 %v1867_v17 }
 0x7f0   :  { %1604 = vmatpush1.bf16.msra.mxu0 %v1890_v23 }
 0x7f1   :  { %1606 = vmatprep.subr.bf16.mxu0 %v1893_v24 }
 0x7f4   :  { %1608 = vmatpush1.bf16.msra.mxu0 %v1919_v31 }
 0x7f5   :  { %1610 = vmatprep.subr.bf16.mxu0 %v1922_v32 }
 0x7f8   :  { %1612 = vmatpush1.bf16.msra.mxu0 %v1938_v36 }
 0x7f9   :  { %1614 = vmatprep.subr.bf16.mxu0 %v1850_v11 }
 0x8be   :  { %v683_v7 = vpop.f32.mrb[6].mxu0 }
 0x8bf   :  { %v688_v8 = vadd.f32 %v683_v7, %v179_v48  ;;  %v685_v9 = vpop.f32.mrb[7].mxu0 }
 0x8c0   :  { %v689_v10 = vadd.f32 %v685_v9, %v181_v5 }
 0x8c1   :  { %1730 = vtanh.f32 %v688_v8 }
 0x8c2   :  { %1732 = vtanh.f32 %v689_v10 }
 0x8cb   :  { %v1731_v12 = vpop.eup %1730 }
 0x8cc   :  { %v1733_v15 = vpop.eup %1732  ;;  %v692_v16 = vmul.f32 0.5, %v1731_v12 }
 0x8cd   :  { %v693_v18 = vmul.f32 %v1733_v15, %v2026_v13  ;;  %v197_v15 = vadd.f32 %v2013_v59, %v2020_v2 }
 0x8ce   :  { %v694_v20 = vadd.f32 0.5, %v692_v16 }
 0x8cf   :  { %v695_v11 = vadd.f32 %v693_v18, %v2028_v19 }
 0x8d0   :  { %v696_v53 = vmul.f32 %v694_v20, %v609_v52 }
 0x8d1   :  { %v697_v21 = vmul.f32 %v695_v11, %v694_v20 }
 0x8d3   :  { %699 = vrot.lane.b32.xlu1 %v697_v21, %s1792_s29 }
 0x945   :  { %v700_v22 = vpop.permute.xlu1 %699 }
 0x946   :  { %v702_v54 = vadd.f32 %v700_v22, %v696_v53 }
 0x948   :  { %1734 = vtanh.f32 %v702_v54 }
 0x952   :  { %v1735_v25 = vpop.eup %1734 }
 0x953   :  { %v704_v26 = vmul.f32 %v1735_v25, %v695_v11 }
 0x955   :  { %706 = vrot.lane.b32.xlu0 %v704_v26, %s1792_s29 }
 0x9c7   :  { %v707_v27 = vpop.permute.xlu0 %706 }
 0x9c8   :  { %1464 = vmatmul.mubr.msk.f32.vlgmr.msra.gmra.mrb[8].mxu0 %vm225_vm2, %v707_v27 }
 0x9c9   :  { %1616 = vmatpush1.bf16.msra.mxu0 %v1858_v14  ;;  %867 = vmatprep.mubr.f32.mxu0 %v1791_v6 }
 0x9ca   :  { %1618 = vmatprep.subr.bf16.mxu0 %v1867_v17 }
 0x9cd   :  { %1620 = vmatpush1.bf16.msra.mxu0 %v1890_v23 }
 0x9ce   :  { %1622 = vmatprep.subr.bf16.mxu0 %v1893_v24 }
 0x9d1   :  { %1624 = vmatpush1.bf16.msra.mxu0 %v1919_v31 }
 0x9d2   :  { %1626 = vmatprep.subr.bf16.mxu0 %v1922_v32 }
 0x9d5   :  { %1628 = vmatpush1.bf16.msra.mxu0 %v1938_v36 }
 0xa9b   :  { %v776_v49 = vpop.f32.mrb[8].mxu0 }
 0xa9c   :  { %v781_v30 = vadd.f32 %v776_v49, %v185_v28  ;;  %v778_v50 = vpop.f32.mrb[9].mxu0 }
 0xa9d   :  { %v782_v33 = vadd.f32 %v778_v50, %v187_v29 }
 0xa9e   :  { %1736 = vtanh.f32 %v781_v30 }
 0xa9f   :  { %1738 = vtanh.f32 %v782_v33 }
 0xaa8   :  { %v1737_v34 = vpop.eup %1736 }
 0xaa9   :  { %v1739_v35 = vpop.eup %1738  ;;  %v785_v37 = vmul.f32 0.5, %v1737_v34 }
 0xaaa   :  { %v786_v38 = vmul.f32 %v1739_v35, %v2026_v13 }
 0xaab   :  { %v787_v39 = vadd.f32 0.5, %v785_v37  ;;  %v1469_v37 = vld [vmem:[%s2231_s3 + $0x39] ss:$0 sm:$0xff] }
 0xaac   :  { %v788_v40 = vadd.f32 %v786_v38, %v2028_v19  ;;  %v1077_v38 = vld [vmem:[%s2231_s3] sm:$0xff] }
 0xaad   :  { %v789_v55 = vmul.f32 %v787_v39, %v702_v54  ;;  %v1468_v54 = vld [vmem:[%s2231_s3 + $0x38] ss:$0 sm:$0xff] }
 0xaae   :  { %v790_v41 = vmul.f32 %v788_v40, %v787_v39  ;;  %v1078_v39 = vld [vmem:[%s2231_s3 + $0x8] sm:$0xff] }
 0xab0   :  { %792 = vrot.lane.b32.xlu1 %v790_v41, %s1792_s29  ;;  %v1080_v41 = vld [vmem:[%s2231_s3 + $0x18] sm:$0xff] }
 0xb22   :  { %v793_v42 = vpop.permute.xlu1 %792 }
 0xb23   :  { %v795_v56 = vadd.f32 %v793_v42, %v789_v55 }
 0xb25   :  { %1740 = vtanh.f32 %v795_v56 }
 0xb2f   :  { %v1741_v43 = vpop.eup %1740 }
 0xb30   :  { %v797_v44 = vmul.f32 %v1741_v43, %v788_v40  ;;  %v1662_v40 = vpack.c.bf16 %v1078_v39, %v1077_v38 }
 0xb32   :  { %799 = vrot.lane.b32.xlu0 %v797_v44, %s1792_s29 }
 0xba4   :  { %v800_v45 = vpop.permute.xlu0 %799 }
 0xba5   :  { %1465 = vmatmul.mubr.msk.f32.vlgmr.msra.gmra.mrb[10].mxu0 %vm225_vm2, %v800_v45 }
 0xc78   :  { %v869_v62 = vpop.f32.mrb[10].mxu0 }
 0xc79   :  { %v874_v63 = vadd.f32 %v869_v62, %v191_v46  ;;  %v871_v51 = vpop.f32.mrb[11].mxu0 }
 0xc7a   :  { %v875_v0 = vadd.f32 %v871_v51, %v193_v61 }
 0xc7b   :  { %1742 = vtanh.f32 %v874_v63 }
 0xc7c   :  { %1744 = vtanh.f32 %v875_v0 }
 0xc85   :  { %v1743_v52 = vpop.eup %1742 }
 0xc86   :  { %v1745_v1 = vpop.eup %1744  ;;  %v878_v47 = vmul.f32 0.5, %v1743_v52 }
 0xc87   :  { %v879_v4 = vmul.f32 %v1745_v1, %v2026_v13 }
 0xc88   :  { %v880_v48 = vadd.f32 0.5, %v878_v47 }
 0xc89   :  { %v881_v5 = vadd.f32 %v879_v4, %v2028_v19 }
 0xc8a   :  { %v882_v57 = vmul.f32 %v880_v48, %v795_v56 }
 0xc8b   :  { %v883_v7 = vmul.f32 %v881_v5, %v880_v48 }
 0xc8d   :  { %885 = vrot.lane.b32.xlu1 %v883_v7, %s1792_s29 }
 0xcff   :  { %v886_v8 = vpop.permute.xlu1 %885 }
 0xd00   :  { %v888_v58 = vadd.f32 %v886_v8, %v882_v57 }
 0xd02   :  { %1746 = vtanh.f32 %v888_v58 }
 0xd0c   :  { %v1747_v9 = vpop.eup %1746 }
 0xd0d   :  { %v890_v10 = vmul.f32 %v1747_v9, %v881_v5 }
 0xd0f   :  { %892 = vrot.lane.b32.xlu0 %v890_v10, %s1792_s29 }
 0xd81   :  { %v893_v12 = vpop.permute.xlu0 %892 }
 0xd82   :  { %1466 = vmatmul.mubr.msk.f32.vlgmr.msra.gmra.mrb[16].mxu1 %vm225_vm2, %v893_v12 }
 0xd83   :  { %1648 = vmatpush1.bf16.msra.mxu1 %v1858_v14  ;;  %1053 = vmatprep.mubr.f32.mxu1 %v1791_v6  ;;  %v199_v14 = vadd.f32 %v2015_v60, %v2022_v3 }
 0xd84   :  { %1650 = vmatprep.subr.bf16.mxu1 %v1867_v17 }
 0xd87   :  { %1652 = vmatpush1.bf16.msra.mxu1 %v1890_v23 }
 0xd88   :  { %1654 = vmatprep.subr.bf16.mxu1 %v1893_v24 }
 0xd8b   :  { %1656 = vmatpush1.bf16.msra.mxu1 %v1919_v31 }
 0xd8c   :  { %1658 = vmatprep.subr.bf16.mxu1 %v1922_v32 }
 0xd8f   :  { %1660 = vmatpush1.bf16.msra.mxu1 %v1938_v36 }
 0xe55   :  { %v962_v16 = vpop.f32.mrb[16].mxu1 }
 0xe56   :  { %v967_v18 = vadd.f32 %v962_v16, %v197_v15  ;;  %v964_v20 = vpop.f32.mrb[17].mxu1 }
 0xe57   :  { %v968_v17 = vadd.f32 %v964_v20, %v199_v14 }
 0xe58   :  { %1748 = vtanh.f32 %v967_v18 }
 0xe59   :  { %1750 = vtanh.f32 %v968_v17 }
 0xe62   :  { %v1749_v23 = vpop.eup %1748 }
 0xe63   :  { %v1751_v24 = vpop.eup %1750  ;;  %v971_v11 = vmul.f32 0.5, %v1749_v23 }
 0xe64   :  { %v972_v31 = vmul.f32 %v1751_v24, %v2026_v13  ;;  %v1081_v24 = vld [vmem:[%s2231_s3 + $0x20] sm:$0xff] }
 0xe65   :  { %v973_v32 = vadd.f32 0.5, %v971_v11  ;;  %v1082_v11 = vld [vmem:[%s2231_s3 + $0x28] sm:$0xff] }
 0xe66   :  { %v974_v36 = vadd.f32 %v972_v31, %v2028_v19  ;;  %v1668_v31 = vpack.c.bf16 %v1082_v11, %v1081_v24  ;;  %v1478_v24 = vld [vmem:[%s2231_s3 + $0x40] ss:$0 sm:$0xff] }
 0xe67   :  { %v975_v59 = vmul.f32 %v973_v32, %v888_v58 }
 0xe68   :  { %v976_v21 = vmul.f32 %v974_v36, %v973_v32  ;;  %v1470_v32 = vld [vmem:[%s2231_s3 + $0x3a] ss:$0 sm:$0xff] }
 0xe6a   :  { %978 = vrot.lane.b32.xlu1 %v976_v21, %s1792_s29 }
 0xedc   :  { %v979_v2 = vpop.permute.xlu1 %978 }
 0xedd   :  { %v981_v60 = vadd.f32 %v979_v2, %v975_v59 }
 0xedf   :  { %1752 = vtanh.f32 %v981_v60 }
 0xee9   :  { %v1753_v3 = vpop.eup %1752 }
 0xeea   :  { %v983_v53 = vmul.f32 %v1753_v3, %v974_v36 }
 0xeec   :  { %985 = vrot.lane.b32.xlu0 %v983_v53, %s1792_s29 }
 0xef0   :  { %1121 = vrot.lane.b32.xlu0 %v1468_v54, %s1794_s6 }
 0xf5e   :  { %v986_v22 = vpop.permute.xlu0 %985 }
 0xf5f   :  { %1467 = vmatmul.mubr.msk.f32.vlgmr.msra.gmra.mrb[18].mxu1 %vm225_vm2, %v986_v22 }
 0xf60   :  { %1498 = vmatprep.mubr.msk.f32.mxu1 %vm1796_vm4, %v1791_v6 }
0x1032   :  { %v1055_v25 = vpop.f32.mrb[18].mxu1 }
0x1033   :  { %v1060_v26 = vadd.f32 %v1055_v25, %v197_v15  ;;  %v1057_v27 = vpop.f32.mrb[19].mxu1 }
0x1034   :  { %v1061_v28 = vadd.f32 %v1057_v27, %v199_v14  ;;  %v1122_v14 = vpop.permute.xlu0 %1121 }
0x1035   :  { %1754 = vtanh.f32 %v1060_v26 }
0x1036   :  { %1756 = vtanh.f32 %v1061_v28 }
0x103f   :  { %v1755_v29 = vpop.eup %1754 }
0x1040   :  { %v1757_v49 = vpop.eup %1756  ;;  %v1064_v30 = vmul.f32 0.5, %v1755_v29 }
0x1041   :  { %v1065_v50 = vmul.f32 %v1757_v49, %v2026_v13  ;;  %v1079_v13 = vld [vmem:[%s2231_s3 + $0x10] sm:$0xff] }
0x1042   :  { %v1066_v33 = vadd.f32 0.5, %v1064_v30  ;;  %v1665_v55 = vpack.c.bf16 %v1080_v41, %v1079_v13  ;;  %v1473_v41 = vld [vmem:[%s2231_s3 + $0x3c] ss:$0 sm:$0xff] }
0x1043   :  { %v1067_v34 = vadd.f32 %v1065_v50, %v2028_v19  ;;  %v1795_v19 = vmov 0.0|0.0  }
0x1044   :  { %1661 = vmatprep.subr.bf16.mxu1 %v1795_v19  ;;  %v1068_v42 = vmul.f32 %v1066_v33, %v981_v60 }
0x1045   :  { %v1069_v35 = vmul.f32 %v1067_v34, %v1066_v33  ;;  %1663 = vmatpush3.bf16.msra.mxu1 %v1662_v40 }
0x1046   :  { %1664 = vmatprep.subr.bf16.mxu1 %v1795_v19 }
0x1047   :  { %1071 = vrot.lane.b32.xlu1 %v1069_v35, %s1792_s29 }
0x1049   :  { %1666 = vmatpush3.bf16.msra.mxu1 %v1665_v55 }
0x104a   :  { %1667 = vmatprep.subr.bf16.mxu1 %v1795_v19  ;;  %v1472_v19 = vld [vmem:[%s2231_s3 + $0x3b] ss:$0 sm:$0xff] }
0x104b   :  { %1130 = vrot.lane.b32.xlu1 %v1469_v37, %s1794_s6 }
0x10b9   :  { %v1072_v56 = vpop.permute.xlu1 %1071 }
0x10ba   :  { %v1074_v43 = vadd.f32 %v1072_v56, %v1068_v42  ;;  %v1083_v56 = vld [vmem:[%s2231_s3 + $0x30] sm:$0xff] }
0x10bc   :  { %1758 = vtanh.f32 %v1074_v43  ;;  %v1474_v43 = vld [vmem:[%s2231_s3 + $0x3d] ss:$0 sm:$0xff] }
0x10bd   :  { %v1131_v18 = vpop.permute.xlu1 %1130 }
0x10c6   :  { %v1759_v44 = vpop.eup %1758 }
0x10c7   :  { %v1076_v45 = vmul.f32 %v1759_v44, %v1067_v34 }
0x10c9   :  { %v1094_v46 = vsel %vm1093_vm5, %v1076_v45, 0.0 }
0x10ca   :  { %v1095_v61 = vrot.slane %v1094_v46, 4 }
0x10cc   :  { %v1096_v62 = vadd.f32 %v1095_v61, %v1094_v46 }
0x10ce   :  { %v1097_v63 = vrot.slane %v1096_v62, 2 }
0x10d0   :  { %v1098_v51 = vadd.f32 %v1097_v63, %v1096_v62 }
0x10d2   :  { %v1099_v0 = vrot.slane %v1098_v51, 1 }
0x10d4   :  { %v1100_v52 = vadd.f32 %v1099_v0, %v1098_v51 }
0x10d6   :  { %v1102_v1 = vmul.f32 0.5, %v1100_v52 }
0x10d8   :  { %v1103_v47 = vsub.f32 %v1076_v45, %v1102_v1 }
0x10da   :  { %v1104_v4 = vmul.f32 %v1103_v47, %v1103_v47 }
0x10dc   :  { %v1105_v48 = vsel %vm1093_vm5, %v1104_v4, 0.0 }
0x10dd   :  { %v1106_v5 = vrot.slane %v1105_v48, 4 }
0x10df   :  { %v1107_v7 = vadd.f32 %v1106_v5, %v1105_v48 }
0x10e1   :  { %v1108_v57 = vrot.slane %v1107_v7, 2 }
0x10e3   :  { %v1109_v8 = vadd.f32 %v1108_v57, %v1107_v7 }
0x10e5   :  { %v1110_v58 = vrot.slane %v1109_v8, 1 }
0x10e7   :  { %v1111_v9 = vadd.f32 %v1110_v58, %v1109_v8 }
0x10e9   :  { %v1112_v10 = vmul.f32 0.5, %v1111_v9 }
0x10eb   :  { %v1113_v12 = vadd.f32 1e-05, %v1112_v10 }
0x10ed   :  { %1760 = vrsqrt.f32 %v1113_v12 }
0x10f7   :  { %v1761_v15 = vpop.eup %1760 }
0x10f8   :  { %v1115_v16 = vmul.f32 %v1761_v15, %v1103_v47 }
0x10fa   :  { %v1124_v20 = vmul.f32 %v1122_v14, %v1115_v16  ;;  %v1476_v16 = vld [vmem:[%s2231_s3 + $0x3e] ss:$0 sm:$0xff] }
0x10fc   :  { %v1133_v17 = vadd.f32 %v1131_v18, %v1124_v20  ;;  %v1477_v20 = vld [vmem:[%s2231_s3 + $0x3f] ss:$0 sm:$0xff] }
0x10fe   :  { %1139 = vrot.lane.b32.xlu0 %v1133_v17, %s1790_s21 }
0x1170   :  { %v1140_v23 = vpop.permute.xlu0 %1139 }
0x1171   :  { %1499 = vmatmul.mubr.msk.f32.vlgmr.msra.gmra.mrb[20].mxu1 %vm218_vm1, %v1140_v23 }
0x1172   :  { %1505 = vmatprep.mubr.msk.f32.mxu1 %vm1796_vm4, %v1791_v6  ;;  %1669 = vmatpush3.bf16.msra.mxu1 %v1668_v31 }
0x1173   :  { %1508 = vmatprep.subr.mxu1 %v1791_v6 }
0x1244   :  { %v1209_v36 = vpop.f32.mrb[20].mxu1 }
0x1245   :  { %v1210_v21 = vadd.f32 %v1470_v32, %v1209_v36  ;;  %v1500_v59 = vpop.f32.mrb[21].mxu1 }
0x1247   :  { %v1213_v2 = vmax.f32 %v1210_v21, 0.0 }
0x1249   :  { %v1215_v60 = vsel %vm1214_vm6, %v1213_v2, 0.0 }
0x124a   :  { %v1216_v3 = vrot.slane %v1215_v60, 4 }
0x124c   :  { %v1217_v53 = vadd.f32 %v1216_v3, %v1215_v60 }
0x124e   :  { %v1218_v22 = vrot.slane %v1217_v53, 2 }
0x1250   :  { %v1219_v54 = vadd.f32 %v1218_v22, %v1217_v53 }
0x1252   :  { %v1220_v25 = vrot.slane %v1219_v54, 1 }
0x1254   :  { %v1221_v26 = vadd.f32 %v1220_v25, %v1219_v54 }
0x1256   :  { %v1222_v27 = vmul.f32 0.5, %v1221_v26 }
0x1258   :  { %v1223_v28 = vsub.f32 %v1213_v2, %v1222_v27 }
0x125a   :  { %v1224_v29 = vmul.f32 %v1223_v28, %v1223_v28 }
0x125c   :  { %v1225_v49 = vsel %vm1214_vm6, %v1224_v29, 0.0 }
0x125d   :  { %v1226_v30 = vrot.slane %v1225_v49, 4 }
0x125f   :  { %v1227_v50 = vadd.f32 %v1226_v30, %v1225_v49 }
0x1261   :  { %v1228_v33 = vrot.slane %v1227_v50, 2 }
0x1263   :  { %v1229_v34 = vadd.f32 %v1228_v33, %v1227_v50 }
0x1265   :  { %v1230_v35 = vrot.slane %v1229_v34, 1 }
0x1267   :  { %v1231_v37 = vadd.f32 %v1230_v35, %v1229_v34 }
0x1269   :  { %v1232_v38 = vmul.f32 0.5, %v1231_v37 }
0x126b   :  { %v1233_v39 = vadd.f32 1e-05, %v1232_v38 }
0x126d   :  { %1762 = vrsqrt.f32 %v1233_v39 }
0x1277   :  { %v1763_v13 = vpop.eup %1762 }
0x1278   :  { %v1235_v40 = vmul.f32 %v1763_v13, %v1223_v28 }
0x127a   :  { %v1240_v55 = vmul.f32 %v1472_v19, %v1235_v40 }
0x127c   :  { %v1245_v42 = vadd.f32 %v1473_v41, %v1240_v55 }
0x127e   :  { %1506 = vmatmul.mubr.msk.f32.vlgmr.msra.gmra.mrb[22].mxu1 %vm63_vm0, %v1245_v42 }
0x127f   :  { %1510 = vmatprep.mubr.msk.f32.mxu1 %vm1796_vm4, %v1791_v6  ;;  %1509 = vmatpush3.msra.mxu1 %v1083_v56 }
0x1351   :  { %v1319_v44 = vpop.f32.mrb[22].mxu1 }
0x1352   :  { %v1320_v45 = vadd.f32 %v1474_v43, %v1319_v44  ;;  %v1507_v46 = vpop.f32.mrb[23].mxu1 }
0x1354   :  { %v1323_v61 = vmax.f32 %v1320_v45, 0.0 }
0x1356   :  { %v1325_v62 = vsel %vm1324_vm7, %v1323_v61, 0.0 }
0x1357   :  { %v1326_v63 = vrot.slane %v1325_v62, 4 }
0x1359   :  { %v1327_v51 = vadd.f32 %v1326_v63, %v1325_v62 }
0x135b   :  { %v1328_v0 = vrot.slane %v1327_v51, 2 }
0x135d   :  { %v1329_v52 = vadd.f32 %v1328_v0, %v1327_v51 }
0x135f   :  { %v1330_v6 = vrot.slane %v1329_v52, 1 }
0x1361   :  { %v1331_v1 = vadd.f32 %v1330_v6, %v1329_v52 }
0x1363   :  { %v1332_v47 = vmul.f32 0.5, %v1331_v1 }
0x1365   :  { %v1333_v4 = vsub.f32 %v1323_v61, %v1332_v47 }
0x1367   :  { %v1334_v48 = vmul.f32 %v1333_v4, %v1333_v4 }
0x1369   :  { %v1335_v5 = vsel %vm1324_vm7, %v1334_v48, 0.0 }
0x136a   :  { %v1336_v7 = vrot.slane %v1335_v5, 4 }
0x136c   :  { %v1337_v57 = vadd.f32 %v1336_v7, %v1335_v5 }
0x136e   :  { %v1338_v8 = vrot.slane %v1337_v57, 2 }
0x1370   :  { %v1339_v58 = vadd.f32 %v1338_v8, %v1337_v57 }
0x1372   :  { %v1340_v9 = vrot.slane %v1339_v58, 1 }
0x1374   :  { %v1341_v10 = vadd.f32 %v1340_v9, %v1339_v58 }
0x1376   :  { %v1342_v12 = vmul.f32 0.5, %v1341_v10 }
0x1378   :  { %v1343_v15 = vadd.f32 1e-05, %v1342_v12 }
0x137a   :  { %1764 = vrsqrt.f32 %v1343_v15 }
0x1384   :  { %v1765_v14 = vpop.eup %1764 }
0x1385   :  { %v1345_v18 = vmul.f32 %v1765_v14, %v1333_v4 }
0x1387   :  { %v1350_v17 = vmul.f32 %v1476_v16, %v1345_v18 }
0x1389   :  { %v1355_v23 = vadd.f32 %v1477_v20, %v1350_v17 }
0x138b   :  { %1511 = vmatmul.mubr.msk.f32.vlgmr.msra.gmra.mrb[24].mxu1 %vm1360_vm8, %v1355_v23 }
0x145e   :  { %v1430_v11 = vpop.f32.mrb[24].mxu1 }
0x145f   :  { %v1431_v31 = vadd.f32 %v1478_v24, %v1430_v11  ;;  %v1512_v32 = vpop.f32.mrb[25].mxu1 }
0x1461   :  { %1435 = vst.msk [vmem:[#allocation2] sm:$0x3] %vm1434_vm9, %v1431_v31 }
0x1462   :  { %1777 = shalt.err (!%p1774_p4)
}
0x1463   :  { %s1778_s13 = scalar_lea.hbm %s2232_s4, 32 }
0x1464   :  { %p1779_p5 = scmp.ne.s32.totalorder %s2232_s4, %s1778_s13  ;;  %p1782_p6 = scmp.lt.u32.totalorder %s1778_s13, %s2232_s4 }
0x1466   :  { %p1784_p7 = pnand %p1782_p6, %p1779_p5 }
0x1468   :  { %1787 = shalt.err (!%p1784_p7)
}
0x1469   :  { %1445 = dma.vmem_to_hbm [thread:$0]  %s1443_s9, 32, %s2232_s4, [#allocation3]  }
0x146a   :  { %1788 = dma.done.wait [#allocation3], 32  }
0x146b   :  { %1789 = vsyncadd [#allocation3], 4294967264 }
0x146c   :  { %1449 = vsyncpa [#allocation3], 1 }

</bundles_post_ra>
